<compile_context>
chip_gen: v7x
topology: tpu7x:2x2x1
jax: 0.10.0
libtpu: 0.0.40
codegen_flags: <defaults>
</compile_context>

<pallas_src>
import functools

import jax
import jax.numpy as jnp
from jax import lax
from jax.experimental import pallas as pl
from jax.experimental.pallas import tpu as pltpu


def _round_up(x, m):
    return -(-x // m) * m


def _device_vmem_bytes():
    """Per-TensorCore VMEM capacity; conservative fallback if unknown."""
    try:
        return int(pltpu.get_tpu_info().vmem_capacity_bytes)
    except Exception:
        return 64 << 20                    # v7x per-core VMEM (smallest current part)


def _step_tile_bytes(tblk, n_batch, num_classes, itemsize):
    """VMEM bytes of one grid step's tiles, including (8,128) layout padding."""
    in_t = _round_up(tblk, 8) * _round_up(n_batch * num_classes, 128) * itemsize
    xt_t = n_batch * _round_up(tblk, 8) * _round_up(num_classes, 128) * itemsize
    tok_t = _round_up(tblk, 8) * _round_up(n_batch, 128) * 4       # (tblk, N) i32
    return in_t + xt_t + tok_t


_SCRATCH_MARGIN = 8 << 20   # in-kernel temporaries (sub-chunk slabs, iotas, selects)


def _pick_tblk(T, n_batch, num_classes, itemsize, vmem_budget):
    """Largest 128-row time tile whose double-buffered footprint fits the budget.

    Also capped near T/2 so the grid has >= 2 steps whenever T allows, letting
    dimension_semantics=("parallel",) shard the time axis across v7x's two
    TensorCores (a single extra ~0.35us step is noise on single-core parts).
    """
    if T <= 128:
        return T
    cap_two_steps = _round_up(pl.cdiv(T, 2), 128)
    per128 = _step_tile_bytes(128, n_batch, num_classes, itemsize)
    by_budget = max((vmem_budget - _SCRATCH_MARGIN) // (2 * per128), 1) * 128
    return int(max(128, min(by_budget, cap_two_steps)))


def _ctc_prep_kernel(len_ref, x_ref, xt_ref, tok_ref, *, blank, num_classes,
                     n_batch, tblk, sub):
    """One time-tile of the CTC front-end.

    len_ref : (N,)          i32 sequence lengths (SMEM, scalar prefetch)
    x_ref   : (TBLK, N*C)   logits tile, time-major, classes folded onto lanes
    xt_ref  : (N, TBLK, C)  transposed emissions tile (batch-major)
    tok_ref : (TBLK, N)     greedy best-path tokens (time-major; blank past length)
    """
    t_base = pl.program_id(0) * tblk
    c_ids = lax.broadcasted_iota(jnp.int32, (sub, num_classes), 1)

    def body(s, carry):
        r0 = pl.multiple_of(s * sub, sub)
        t_col = t_base + r0 + lax.broadcasted_iota(jnp.int32, (sub, 1), 0)
        cols = []
        for n in range(n_batch):
            # Per-batch slab: lane-aligned view of the folded input.  A single
            # load feeds both the transpose store and the argmax reductions.
            slab = x_ref[pl.ds(r0, sub), pl.ds(n * num_classes, num_classes)]
            # torch.transpose(emissions, 0, 1), tile-wise.
            xt_ref[n, pl.ds(r0, sub), :] = slab
            # Greedy best path: first-occurrence argmax over classes.
            m = jnp.max(slab, axis=-1, keepdims=True)
            idx = jnp.min(jnp.where(slab == m, c_ids, num_classes),
                          axis=-1, keepdims=True)                    # (sub, 1)
            # Mask time steps past this sequence's length with the blank token.
            cols.append(jnp.where(t_col < len_ref[n], idx, blank))
        tok_ref[pl.ds(r0, sub), :] = jnp.concatenate(cols, axis=1).astype(jnp.int32)
        return carry

    lax.fori_loop(0, tblk // sub, body, 0)


def beam_ctc_decoder_forward(emissions, lengths, blank, *, tblk=None):
    """emissions: (T, N, C) logits; lengths: (N,) int.

    Returns:
      xt     : (N, T, C)  -- torch.transpose(emissions, 0, 1)
      tokens : (N, T) i32 -- greedy best-path ids, `blank` past each length
    """
    T, N, C = emissions.shape
    itemsize = jnp.dtype(emissions.dtype).itemsize

    vmem_cap = _device_vmem_bytes()
    vmem_budget = (vmem_cap * 3) // 4            # ~48 MiB on v7x, ~96 MiB on v5e/v6e

    if tblk is None:
        tblk = _pick_tblk(T, N, C, itemsize, vmem_budget)
    tblk = int(min(tblk, T))
    if tblk >= 128:
        tblk = (tblk // 128) * 128               # 128-row tiles; last block may be partial
    elif tblk < T:
        tblk = max((tblk // 8) * 8, 8)           # sublane-aligned small tiles
    sub = tblk if tblk <= 128 else 128           # in-kernel working-set chunk
    num_t = int(pl.cdiv(T, tblk))

    resident = 2 * _step_tile_bytes(tblk, N, C, itemsize) + _SCRATCH_MARGIN
    vmem_limit = int(min(max(resident, 16 << 20), vmem_budget))

    lengths_i32 = lengths.astype(jnp.int32).reshape(N)
    x2d = emissions.reshape(T, N * C)            # free contiguous fold -> lane-dense

    kernel = functools.partial(_ctc_prep_kernel, blank=int(blank),
                               num_classes=C, n_batch=N, tblk=tblk, sub=sub)

    xt, tok_tn = pl.pallas_call(
        kernel,
        out_shape=(jax.ShapeDtypeStruct((N, T, C), emissions.dtype),
                   jax.ShapeDtypeStruct((T, N), jnp.int32)),
        grid_spec=pltpu.PrefetchScalarGridSpec(
            num_scalar_prefetch=1,
            grid=(num_t,),
            in_specs=[pl.BlockSpec((tblk, N * C), lambda t, lens: (t, 0))],
            out_specs=(pl.BlockSpec((N, tblk, C), lambda t, lens: (0, t, 0)),
                       pl.BlockSpec((tblk, N), lambda t, lens: (t, 0))),
        ),
        compiler_params=pltpu.CompilerParams(
            dimension_semantics=("parallel",),
            vmem_limit_bytes=vmem_limit),
    )(lengths_i32, x2d)

    # Tokens come out time-major (natural layout of the lane reduction); the
    # (T,N)->(N,T) flip is T*N*4 bytes (~1/C of total traffic) in the wrapper.
    tokens = jnp.transpose(tok_tn, (1, 0))

    # TODO(synk): flashlight lexicon + KenLM beam search and tokenizer string
    # decoding are host-side, non-tensor code; no Pallas equivalent.
    return xt, tokens


if __name__ == "__main__":
    key = jax.random.PRNGKey(0)
    T, N, C = 256, 2, 128        # seq, batch, classes (vocab + extras + blank)
    blank = 112                  # synthetic tokenizer: blank = vocab_size

    emissions = jax.random.normal(key, (T, N, C), dtype=jnp.float32)
    lengths = jnp.array([256, 173], dtype=jnp.int32)

    # plain-JAX reference
    ref_xt = jnp.transpose(emissions, (1, 0, 2))
    ref_tok = jnp.argmax(emissions, axis=-1).astype(jnp.int32).T        # (N, T)
    mask = jnp.arange(T)[None, :] < lengths[:, None]
    ref_tok = jnp.where(mask, ref_tok, blank)

    # auto-sized tile (>= 2 grid steps -> exercises the pipelined path)
    xt, tok = beam_ctc_decoder_forward(emissions, lengths, blank)
    jax.block_until_ready((xt, tok))
    assert xt.shape == (N, T, C) and tok.shape == (N, T)
    assert jnp.allclose(xt, ref_xt), "transpose mismatch (auto tile)"
    assert jnp.array_equal(tok, ref_tok), "best-path mismatch (auto tile)"

    # forced full-T block -> exercises the in-kernel sub-chunk loop (nsub > 1)
    xt2, tok2 = beam_ctc_decoder_forward(emissions, lengths, blank, tblk=256)
    jax.block_until_ready((xt2, tok2))
    assert jnp.allclose(xt2, ref_xt), "transpose mismatch (full block)"
    assert jnp.array_equal(tok2, ref_tok), "best-path mismatch (full block)"

    print("KERNEL_OK")
</pallas_src>

<mosaic_0001>
module attributes {stable_mosaic.version = 11 : i64} {
  func.func @_ctc_prep_kernel(%arg0: i32, %arg1: memref<2xi32, #tpu.memory_space<smem>>, %arg2: memref<128x256xf32, #tpu.memory_space<vmem>>, %arg3: memref<2x128x128xf32, #tpu.memory_space<vmem>>, %arg4: memref<128x2xi32, #tpu.memory_space<vmem>>) attributes {dimension_semantics = [#tpu.dimension_semantics<parallel>], iteration_bounds = array<i64: 2>, scalar_prefetch = 1 : i64, scratch_operands = 0 : i64, tpu.core_type = #tpu.core_type<tc>, window_params = [{transform_indices = @transform_0, window_bounds = array<i64: 128, 256>}, {transform_indices = @transform_1, window_bounds = array<i64: 2, 128, 128>}, {transform_indices = @transform_2, window_bounds = array<i64: 128, 2>}]} {
    %c128_i32 = arith.constant 128 : i32
    %0 = arith.muli %arg0, %c128_i32 : i32
    %1 = tpu.iota {dimensions = array<i32: 1>} : vector<128x128xi32>
    %c0_i32 = arith.constant 0 : i32
    %c128_i32_0 = arith.constant 128 : i32
    %2 = arith.muli %c0_i32, %c128_i32_0 : i32
    %3 = tpu.assume_multiple %2, 128 : i32
    %4 = arith.addi %0, %3 : i32
    %5 = tpu.iota {dimensions = array<i32: 0>} : vector<128x1xi32>
    %6 = vector.broadcast %4 : i32 to vector<128x1xi32>
    %7 = arith.addi %6, %5 : vector<128x1xi32>
    %8 = arith.index_cast %3 : i32 to index
    %c0 = arith.constant 0 : index
    %9 = vector.load %arg2[%8, %c0] : memref<128x256xf32, #tpu.memory_space<vmem>>, vector<128x128xf32>
    %c0_1 = arith.constant 0 : index
    %10 = arith.index_cast %3 : i32 to index
    %c0_2 = arith.constant 0 : index
    %11 = vector.load %arg3[%c0_1, %10, %c0_2] : memref<2x128x128xf32, #tpu.memory_space<vmem>>, vector<1x128x128xf32>
    %12 = vector.shape_cast %11 : vector<1x128x128xf32> to vector<128x128xf32>
    %13 = vector.shape_cast %9 : vector<128x128xf32> to vector<1x128x128xf32>
    tpu.vector_store %arg3[%c0_1, %10, %c0_2], %13 {strides = array<i32>} : memref<2x128x128xf32, #tpu.memory_space<vmem>>, vector<1x128x128xf32>,
    %cst = arith.constant dense<0xFF800000> : vector<128xf32>
    %14 = vector.multi_reduction <maximumf>, %9, %cst [1] : vector<128x128xf32> to vector<128xf32>
    %15 = vector.shape_cast %14 : vector<128xf32> to vector<128x1xf32>
    %16 = vector.broadcast %15 : vector<128x1xf32> to vector<128x128xf32>
    %17 = arith.cmpf oeq, %9, %16 : vector<128x128xf32>
    %c128_i32_3 = arith.constant 128 : i32
    %18 = vector.broadcast %c128_i32_3 : i32 to vector<128x128xi32>
    %19 = arith.select %17, %1, %18 : vector<128x128xi1>, vector<128x128xi32>
    %cst_4 = arith.constant dense<2147483647> : vector<128xi32>
    %20 = vector.multi_reduction <minsi>, %19, %cst_4 [1] : vector<128x128xi32> to vector<128xi32>
    %21 = vector.shape_cast %20 : vector<128xi32> to vector<128x1xi32>
    %c0_5 = arith.constant 0 : index
    %22 = memref.load %arg1[%c0_5] : memref<2xi32, #tpu.memory_space<smem>>
    %23 = vector.broadcast %22 : i32 to vector<128x1xi32>
    %24 = arith.cmpi slt, %7, %23 : vector<128x1xi32>
    %c112_i32 = arith.constant 112 : i32
    %25 = vector.broadcast %c112_i32 : i32 to vector<128x1xi32>
    %26 = arith.select %24, %21, %25 : vector<128x1xi1>, vector<128x1xi32>
    %27 = arith.index_cast %3 : i32 to index
    %c128 = arith.constant 128 : index
    %28 = vector.load %arg2[%27, %c128] : memref<128x256xf32, #tpu.memory_space<vmem>>, vector<128x128xf32>
    %c1 = arith.constant 1 : index
    %29 = arith.index_cast %3 : i32 to index
    %c0_6 = arith.constant 0 : index
    %30 = vector.load %arg3[%c1, %29, %c0_6] : memref<2x128x128xf32, #tpu.memory_space<vmem>>, vector<1x128x128xf32>
    %31 = vector.shape_cast %30 : vector<1x128x128xf32> to vector<128x128xf32>
    %32 = vector.shape_cast %28 : vector<128x128xf32> to vector<1x128x128xf32>
    tpu.vector_store %arg3[%c1, %29, %c0_6], %32 {strides = array<i32>} : memref<2x128x128xf32, #tpu.memory_space<vmem>>, vector<1x128x128xf32>,
    %cst_7 = arith.constant dense<0xFF800000> : vector<128xf32>
    %33 = vector.multi_reduction <maximumf>, %28, %cst_7 [1] : vector<128x128xf32> to vector<128xf32>
    %34 = vector.shape_cast %33 : vector<128xf32> to vector<128x1xf32>
    %35 = vector.broadcast %34 : vector<128x1xf32> to vector<128x128xf32>
    %36 = arith.cmpf oeq, %28, %35 : vector<128x128xf32>
    %c128_i32_8 = arith.constant 128 : i32
    %37 = vector.broadcast %c128_i32_8 : i32 to vector<128x128xi32>
    %38 = arith.select %36, %1, %37 : vector<128x128xi1>, vector<128x128xi32>
    %cst_9 = arith.constant dense<2147483647> : vector<128xi32>
    %39 = vector.multi_reduction <minsi>, %38, %cst_9 [1] : vector<128x128xi32> to vector<128xi32>
    %40 = vector.shape_cast %39 : vector<128xi32> to vector<128x1xi32>
    %c1_10 = arith.constant 1 : index
    %41 = memref.load %arg1[%c1_10] : memref<2xi32, #tpu.memory_space<smem>>
    %42 = vector.broadcast %41 : i32 to vector<128x1xi32>
    %43 = arith.cmpi slt, %7, %42 : vector<128x1xi32>
    %c112_i32_11 = arith.constant 112 : i32
    %44 = vector.broadcast %c112_i32_11 : i32 to vector<128x1xi32>
    %45 = arith.select %43, %40, %44 : vector<128x1xi1>, vector<128x1xi32>
    %46 = tpu.concatenate %26, %45 in 1 : vector<128x1xi32>, vector<128x1xi32> -> vector<128x2xi32>
    %47 = arith.index_cast %3 : i32 to index
    %c0_12 = arith.constant 0 : index
    %48 = vector.load %arg4[%47, %c0_12] : memref<128x2xi32, #tpu.memory_space<vmem>>, vector<128x2xi32>
    tpu.vector_store %arg4[%47, %c0_12], %46 {strides = array<i32>} : memref<128x2xi32, #tpu.memory_space<vmem>>, vector<128x2xi32>,
    %c1_i32 = arith.constant 1 : i32
    return
  }
  func.func @transform_0(%arg0: i32, %arg1: memref<2xi32, #tpu.memory_space<smem>>) -> (i32, i32) {
    %c0_i32 = arith.constant 0 : i32
    %c0_i32_0 = arith.constant 0 : i32
    return %arg0, %c0_i32 : i32, i32
  }
  func.func @transform_1(%arg0: i32, %arg1: memref<2xi32, #tpu.memory_space<smem>>) -> (i32, i32, i32) {
    %c0_i32 = arith.constant 0 : i32
    %c0_i32_0 = arith.constant 0 : i32
    %c0_i32_1 = arith.constant 0 : i32
    return %c0_i32, %arg0, %c0_i32_0 : i32, i32, i32
  }
  func.func @transform_2(%arg0: i32, %arg1: memref<2xi32, #tpu.memory_space<smem>>) -> (i32, i32) {
    %c0_i32 = arith.constant 0 : i32
    %c0_i32_0 = arith.constant 0 : i32
    return %arg0, %c0_i32 : i32, i32
  }
}

</mosaic_0001>

<bundles_post_ra>
// kernel: tpu_custom_call.1
= control target key start
LH: loop header
LB: loop body
LE: loop exit
PB: predicated region body
PF: predicated region fallthrough
CT: control target
= control target key end

     0   :  { %s2562_s0 = inlined_call_operand.hbm [shape: s32[2], index: 0, kind: input, shape index: {}]   ;;  %s2563_s1 = inlined_call_operand.hbm [shape: f32[256,256], index: 1, kind: input, shape index: {}]   ;;  %s2564_s2 = inlined_call_operand.hbm [shape: f32[2,256,128], index: 2, kind: output, shape index: {0}]   ;;  %s2565_s3 = inlined_call_operand.vmem [shape: s32[256,2], index: 3, kind: output, shape index: {1}]  }
   0x1   :  { %s1220_s14 = scalar_lea.hbm %s2562_s0, 16 }
   0x2   :  { %p1221_p0 = scmp.ne.s32.totalorder %s2562_s0, %s1220_s14  ;;  %p1224_p1 = scmp.lt.u32.totalorder %s1220_s14, %s2562_s0 }
   0x4   :  { %p1226_p2 = pnand %p1224_p1, %p1221_p0 }
   0x6   :  { %1229 = shalt.err (!%p1226_p2)  }
   0x7   :  { %s1302_s19 = smov [#allocation3]  }
   0x8   :  { %10 = dma.hbm_to_smem %s2562_s0, 16, %s1302_s19, [#allocation2] }
   0x9   :  { %1276 = dma.done.wait [#allocation2], 16 }
   0xa   :  { %1277 = vsyncadd [#allocation2], 4294967280 }
   0xb   :  { %12 = sfence }
   0xc   :  { %13 = vsyncpa [#allocation5], 0 }
   0xd   :  { %15 = vsyncpa [#allocation5 + $0x1], 0 }
   0xe   :  { %16 = vsyncpa [#allocation6], 0 }
   0xf   :  { %18 = vsyncpa [#allocation6 + $0x1], 0  ;;  %s1345_s22 = smov 0   ;;  %s1347_s23 = smov 0  }
  0x10   :  { %s1349_s24 = smov 0   ;;  %s1351_s25 = smov 0  }
  0x11 LB: > { %s1366_s0 = sadd.s32 4294967295, %s1300_s25   ;;  %s1120_s26 = sadd.s32 4294967294, %s1300_s25   ;;  %s1300_s25 = sphi %s1351_s25, %s2634_s25   ;;  %s1296_s24 = sphi %s1349_s24, %s2633_s24   ;;  %s1292_s23 = sphi %s1347_s23, %s2632_s23   ;;  %s1288_s22 = sphi %s1345_s22, %s2631_s22  }
  0x12   : > { %s1370_s27 = sadd.s32 1, %s1300_s25   ;;  %s31_s28 = sadd.s32 1, %s1296_s24 }
  0x13   : > { %s28_s29 = ssub.s32 %s1300_s25, %s1370_s27  ;;  %p38_p3 = scmp.ne.s32.totalorder %s1296_s24, %s1292_s23 }
  0x14   : > { %p29_p4 = scmp.eq.s32.totalorder %s28_s29, 0  ;;  %p39_p5 = scmp.eq.s32.totalorder %s1300_s25, 0 }
  0x15   : > { %p44_p6 = scmp.ne.s32.totalorder %s1292_s23, %s1288_s22  ;;  %p45_p7 = scmp.eq.s32.totalorder %s1366_s0, 0 }
  0x16   : > { %s1382_s30 = scalar_select %p29_p4, %s1296_s24, %s31_s28  }
  0x17   : > { %p1384_p8 = por %p39_p5, %p38_p3  ;;  %p1388_p9 = por %p45_p7, %p44_p6 }
  0x18   : > { %p68_p10 = scmp.eq.s32.totalorder %s1366_s0, 1  ;;  %p74_p11 = scmp.eq.s32.totalorder %s1120_s26, 1 }
  0x19   : > { %p1176_p13 = scmp.lt.s32.totalorder %s1300_s25, 2  ;;  %s120_s8 = sand.u32 1, %s1296_s24  }
  0x1a   : > { %p1395_p0 = por %p68_p10, %p38_p3  ;;  %p1399_p1 = por %p74_p11, %p44_p6 }
  0x1b   : > { %s1156_s9 = sshll.u32 %s1300_s25, 12  ;;  %s1123_s10 = sshll.u32 %s120_s8, 8 }
  0x1c   : > { %s2582_s6 = scalar_select %p1395_p0, 1, 0 }
  0x1d   : > { %s2583_s7 = scalar_select %p1399_p1, 1, 0 }
  0x1e   : > { %s1408_s13 = scalar_lea.hbm %s2563_s1, %s1156_s9  ;;  %s124_s14 = scalar_lea.vmem [#allocation4], %s1123_s10 }
  0x1f   : > { %s132_s15 = sshll.u32 %s124_s14, 4  ;;  %p1412_p2 = pnand %p1176_p13, %p1384_p8  ;;  %s1416_s15 = int_to_ptr.vmem [resolvable:$true] %s132_s15 }
  0x20   : > { %s1418_s17 = scalar_lea.sflag [#allocation5], %s120_s8  ;;  %s1230_s18 = scalar_lea.hbm %s1408_s13, 4096 }
  0x21   : > { %p1231_p3 = scmp.ne.s32.totalorder %s1408_s13, %s1230_s18  ;;  %p1232_p4 = pneg %p1412_p2 }
  0x22   : > { %s1235_s21 = scalar_lea.hbm %s2563_s1, 8192  ;;  %p1236_p7 = scmp.lt.u32.totalorder %s1408_s13, %s2563_s1 }
  0x23   : > { %p1233_p5 = pnand %p1232_p4, %p1231_p3  ;;  %p1237_p8 = scmp.lt.u32.totalorder %s1235_s21, %s1230_s18 }
  0x24   : > { %p1239_p11 = scmp.lt.u32.totalorder %s1230_s18, %s1408_s13 }
  0x25   : > { %p1234_p6 = pneg %p1233_p5  ;;  %p1238_p10 = por %p1237_p8, %p1236_p7 }
  0x27   : > { %p1240_p13 = por %p1239_p11, %p1238_p10 }
  0x29   : > { %p1241_p12 = pnand %p1240_p13, %p1234_p6 }
  0x2b   : > { %1244 = shalt.err (!%p1241_p12)
}
  0x2c   : > { %s1245_s29 = scalar_lea.vmem %s1416_s15, 4096  ;;  %s1303_s4 = smov [#allocation4]  }
  0x2d   : > { %p1246_p3 = scmp.ne.s32.totalorder %s1416_s15, %s1245_s29  ;;  %s1250_s8 = sshll.u32 %s1303_s4, 4  ;;  %s1251_s8 = int_to_ptr.vmem [resolvable:$false] %s1250_s8 }
  0x2e   : > { %s1252_s9 = scalar_lea.vmem %s1251_s8, 8192  ;;  %p1253_p0 = scmp.lt.s32.totalorder %s1416_s15, %s1251_s8 }
  0x2f   : > { %p1248_p5 = pnand %p1246_p3, %p1232_p4  ;;  %p1254_p7 = scmp.lt.s32.totalorder %s1252_s9, %s1245_s29 }
  0x31   : > { %p1249_p1 = pneg %p1248_p5  ;;  %p1255_p8 = por %p1254_p7, %p1253_p0 }
  0x33   : > { %p1256_p10 = pnand %p1255_p8, %p1249_p1 }
  0x35   : > { %1259 = shalt.err (!%p1256_p10)
}
  0x36   : > { %s1304_s10 = smov 256   ;;  %s1305_s11 = smov 16  }
  0x37   : > { %1171 = dma.hbm_to_vmem [thread:$0]  (!%p1412_p2), %s1408_s13, 4096, %s1416_s15, %s1418_s17, %s1304_s10, %s1304_s10, %s1305_s11  }
  0x38   : > { %p1127_p12 = scmp.ge.s32.totalorder %s1300_s25, 1  ;;  %p140_p4 = scmp.lt.s32.totalorder %s1300_s25, 3 }
  0x3a   : > { %p141_p6 = pnand %p1127_p12, %p140_p4 }
  0x3c   : > { %144 = sbr.rel (%p141_p6) target bundleno = 588 (0x24c), region = 24 }
  0x43   : > { %s1449_s12 = sand.u32 1, %s1292_s23  }
  0x44   : > { %s1128_s14 = sshll.u32 %s1449_s12, 8  ;;  %s147_s18 = scalar_lea.sflag [#allocation5], %s1449_s12 }
  0x45   : > { %s1453_s19 = scalar_lea.vmem [#allocation4], %s1128_s14 }
  0x46   : > { %1279 = dma.done.wait (%p1388_p9), %s147_s18, 4096  }
  0x47   : > { %1281 = vsyncadd (%p1388_p9), %s147_s18, 4294963200  ;;  %v1460_v0 = vld [vmem:[%s1453_s19] sm:$0xff]  ;;  %v1466_v2 = vld [vmem:[%s1453_s19 + $0x10] sm:$0xff]  ;;  %s1469_s13 = scalar_lea.vmem [#allocation7], %s1128_s14  ;;  %v2567_v32 = vlaneseq  ;;  %s545_s5 = sld [smem:[#allocation3]] }
  0x48   : > { %v1463_v1 = vld [vmem:[%s1453_s19 + $0x20] sm:$0xff]  ;;  %257 = vmax.xlane.f32.xlu0 %v1460_v0  ;;  %241 = vst [vmem:[%s1469_s13] sm:$0xff] %v1460_v0  ;;  %242 = vst [vmem:[%s1469_s13 + $0x8] sm:$0xff] %v1466_v2  ;;  %v1479_v3 = vld [vmem:[%s1453_s19 + $0x30] sm:$0xff]  ;;  %s1132_s15 = sshll.u32 %s1366_s0, 7  ;;  %s2171_s16 = sld [smem:[#allocation3 + $0x1]] }
  0x49   : > { %261 = vmax.xlane.f32.xlu1 %v1463_v1  ;;  %243 = vst [vmem:[%s1469_s13 + $0x10] sm:$0xff] %v1463_v1  ;;  %v1482_v4 = vld [vmem:[%s1453_s19 + $0x40] sm:$0xff]  ;;  %v1485_v5 = vld [vmem:[%s1453_s19 + $0x50] sm:$0xff]  ;;  %244 = vst [vmem:[%s1469_s13 + $0x18] sm:$0xff] %v1479_v3  ;;  %v1654_v33 = vand.u32 127, %v2567_v32  ;;  %s1130_s17 = sshll.u32 %s1366_s0, 4 }
  0x4a   : > { %245 = vst [vmem:[%s1469_s13 + $0x20] sm:$0xff] %v1482_v4  ;;  %246 = vst [vmem:[%s1469_s13 + $0x28] sm:$0xff] %v1485_v5  ;;  %v1494_v6 = vld [vmem:[%s1453_s19 + $0x60] sm:$0xff]  ;;  %v1497_v7 = vld [vmem:[%s1453_s19 + $0x70] sm:$0xff]  ;;  %p2211_p9 = scmp.lt.s32.totalorder %s1130_s17, 31  ;;  %s970_s4 = scalar_lea.sflag [#allocation6], %s1449_s12 }
  0x4b   : > { %v1500_v8 = vld [vmem:[%s1453_s19 + $0x80] sm:$0xff]  ;;  %247 = vst [vmem:[%s1469_s13 + $0x30] sm:$0xff] %v1494_v6  ;;  %248 = vst [vmem:[%s1469_s13 + $0x38] sm:$0xff] %v1497_v7  ;;  %v1509_v9 = vld [vmem:[%s1453_s19 + $0x90] sm:$0xff] }
  0x4c   : > { %249 = vst [vmem:[%s1469_s13 + $0x40] sm:$0xff] %v1500_v8  ;;  %v1512_v10 = vld [vmem:[%s1453_s19 + $0xa0] sm:$0xff]  ;;  %v1515_v11 = vld [vmem:[%s1453_s19 + $0xb0] sm:$0xff]  ;;  %250 = vst [vmem:[%s1469_s13 + $0x48] sm:$0xff] %v1509_v9  ;;  %259 = vmax.xlane.f32.xlu0 %v1466_v2  ;;  %s2636_s17 = smov (!%p2211_p9, %s1130_s17), 31 }
  0x4d   : > { %251 = vst [vmem:[%s1469_s13 + $0x50] sm:$0xff] %v1512_v10  ;;  %252 = vst [vmem:[%s1469_s13 + $0x58] sm:$0xff] %v1515_v11  ;;  %v1524_v12 = vld [vmem:[%s1453_s19 + $0xc0] sm:$0xff]  ;;  %v1527_v13 = vld [vmem:[%s1453_s19 + $0xd0] sm:$0xff]  ;;  %263 = vmax.xlane.f32.xlu1 %v1479_v3  ;;  %s1131_s21 = sshll.u32 %s2636_s17, 3 }
  0x4e   : > { %v1530_v14 = vld [vmem:[%s1453_s19 + $0xe0] sm:$0xff]  ;;  %253 = vst [vmem:[%s1469_s13 + $0x60] sm:$0xff] %v1524_v12  ;;  %254 = vst [vmem:[%s1469_s13 + $0x68] sm:$0xff] %v1527_v13  ;;  %v1541_v15 = vld [vmem:[%s1453_s19 + $0xf0] sm:$0xff]  ;;  %s2310_s29 = scalar_lea.vmem %s2565_s3, %s1131_s21 }
  0x4f   : > { %255 = vst [vmem:[%s1469_s13 + $0x70] sm:$0xff] %v1530_v14  ;;  %v1544_v16 = vld [vmem:[%s1453_s19 + $0x8] sm:$0xff]  ;;  %v1547_v17 = vld [vmem:[%s1453_s19 + $0x18] sm:$0xff]  ;;  %256 = vst [vmem:[%s1469_s13 + $0x78] sm:$0xff] %v1541_v15 }
  0x50   : > { %1133 = vst [vmem:[%s1469_s13 + $0x80] sm:$0xff] %v1544_v16  ;;  %1134 = vst [vmem:[%s1469_s13 + $0x88] sm:$0xff] %v1547_v17  ;;  %v1556_v18 = vld [vmem:[%s1453_s19 + $0x28] sm:$0xff]  ;;  %v1559_v19 = vld [vmem:[%s1453_s19 + $0x38] sm:$0xff]  ;;  %265 = vmax.xlane.f32.xlu0 %v1482_v4 }
  0x51   : > { %v1562_v20 = vld [vmem:[%s1453_s19 + $0x48] sm:$0xff]  ;;  %1135 = vst [vmem:[%s1469_s13 + $0x90] sm:$0xff] %v1556_v18  ;;  %1136 = vst [vmem:[%s1469_s13 + $0x98] sm:$0xff] %v1559_v19  ;;  %v1571_v21 = vld [vmem:[%s1453_s19 + $0x58] sm:$0xff]  ;;  %267 = vmax.xlane.f32.xlu1 %v1485_v5 }
  0x52   : > { %1137 = vst [vmem:[%s1469_s13 + $0xa0] sm:$0xff] %v1562_v20  ;;  %v1574_v22 = vld [vmem:[%s1453_s19 + $0x68] sm:$0xff]  ;;  %v1577_v23 = vld [vmem:[%s1453_s19 + $0x78] sm:$0xff]  ;;  %1138 = vst [vmem:[%s1469_s13 + $0xa8] sm:$0xff] %v1571_v21 }
  0x53   : > { %1139 = vst [vmem:[%s1469_s13 + $0xb0] sm:$0xff] %v1574_v22  ;;  %1140 = vst [vmem:[%s1469_s13 + $0xb8] sm:$0xff] %v1577_v23  ;;  %v1586_v24 = vld [vmem:[%s1453_s19 + $0x88] sm:$0xff]  ;;  %v1589_v25 = vld [vmem:[%s1453_s19 + $0x98] sm:$0xff] }
  0x54   : > { %v1592_v26 = vld [vmem:[%s1453_s19 + $0xa8] sm:$0xff]  ;;  %1141 = vst [vmem:[%s1469_s13 + $0xc0] sm:$0xff] %v1586_v24  ;;  %1142 = vst [vmem:[%s1469_s13 + $0xc8] sm:$0xff] %v1589_v25  ;;  %v1603_v27 = vld [vmem:[%s1453_s19 + $0xb8] sm:$0xff]  ;;  %269 = vmax.xlane.f32.xlu0 %v1494_v6 }
  0x55   : > { %1143 = vst [vmem:[%s1469_s13 + $0xd0] sm:$0xff] %v1592_v26  ;;  %v1606_v28 = vld [vmem:[%s1453_s19 + $0xc8] sm:$0xff]  ;;  %v1609_v29 = vld [vmem:[%s1453_s19 + $0xd8] sm:$0xff]  ;;  %1144 = vst [vmem:[%s1469_s13 + $0xd8] sm:$0xff] %v1603_v27  ;;  %271 = vmax.xlane.f32.xlu1 %v1497_v7 }
  0x56   : > { %1145 = vst [vmem:[%s1469_s13 + $0xe0] sm:$0xff] %v1606_v28  ;;  %1146 = vst [vmem:[%s1469_s13 + $0xe8] sm:$0xff] %v1609_v29  ;;  %v1618_v30 = vld [vmem:[%s1453_s19 + $0xe8] sm:$0xff]  ;;  %v1621_v31 = vld [vmem:[%s1453_s19 + $0xf8] sm:$0xff] }
  0x57   : > { %1147 = vst [vmem:[%s1469_s13 + $0xf0] sm:$0xff] %v1618_v30  ;;  %1148 = vst [vmem:[%s1469_s13 + $0xf8] sm:$0xff] %v1621_v31 }
  0x58   : > { %273 = vmax.xlane.f32.xlu0 %v1500_v8 }
  0x59   : > { %275 = vmax.xlane.f32.xlu1 %v1509_v9 }
  0x5c   : > { %277 = vmax.xlane.f32.xlu0 %v1512_v10 }
  0x5d   : > { %279 = vmax.xlane.f32.xlu1 %v1515_v11 }
  0x60   : > { %281 = vmax.xlane.f32.xlu0 %v1524_v12 }
  0x61   : > { %283 = vmax.xlane.f32.xlu1 %v1527_v13 }
  0x64   : > { %285 = vmax.xlane.f32.xlu0 %v1530_v14 }
  0x65   : > { %287 = vmax.xlane.f32.xlu1 %v1541_v15 }
  0x68   : > { %613 = vmax.xlane.f32.xlu0 %v1544_v16 }
  0x69   : > { %615 = vmax.xlane.f32.xlu1 %v1547_v17 }
  0x6c   : > { %617 = vmax.xlane.f32.xlu0 %v1556_v18 }
  0x6d   : > { %619 = vmax.xlane.f32.xlu1 %v1559_v19 }
  0x70   : > { %621 = vmax.xlane.f32.xlu0 %v1562_v20 }
  0x71   : > { %623 = vmax.xlane.f32.xlu1 %v1571_v21 }
  0x74   : > { %625 = vmax.xlane.f32.xlu0 %v1574_v22 }
  0x75   : > { %627 = vmax.xlane.f32.xlu1 %v1577_v23 }
  0x78   : > { %629 = vmax.xlane.f32.xlu0 %v1586_v24 }
  0x79   : > { %631 = vmax.xlane.f32.xlu1 %v1589_v25 }
  0x7c   : > { %633 = vmax.xlane.f32.xlu0 %v1592_v26 }
  0x7d   : > { %635 = vmax.xlane.f32.xlu1 %v1603_v27 }
  0x80   : > { %637 = vmax.xlane.f32.xlu0 %v1606_v28 }
  0x81   : > { %639 = vmax.xlane.f32.xlu1 %v1609_v29 }
  0x84   : > { %641 = vmax.xlane.f32.xlu0 %v1618_v30 }
  0x85   : > { %643 = vmax.xlane.f32.xlu1 %v1621_v31 }
  0xd5   : > { %v258_v34 = vpop.xlane.xlu0 %257 }
  0xd6   : > { %v262_v35 = vpop.xlane.xlu1 %261  ;;  %vm289_vm0 = vcmp.eq.f32.partialorder %v1460_v0, %v258_v34 }
  0xd7   : > { %vm291_vm1 = vcmp.eq.f32.partialorder %v1463_v1, %v262_v35  ;;  %v1659_v36 = vsel %vm289_vm0, %v1654_v33, 128 }
  0xd8   : > { %v1662_v37 = vsel %vm291_vm1, %v1654_v33, 128  ;;  %v322_v38 = vshra.s32 %v1659_v36, 16 }
  0xd9   : > { %v350_v39 = vshra.s32 %v1662_v37, 16  ;;  %v260_v40 = vpop.xlane.xlu0 %259 }
  0xda   : > { %v264_v41 = vpop.xlane.xlu1 %263  ;;  %vm290_vm2 = vcmp.eq.f32.partialorder %v1466_v2, %v260_v40  ;;  %v1667_v42 = vcvt.s32.f32 %v322_v38 }
  0xdb   : > { %vm292_vm3 = vcmp.eq.f32.partialorder %v1479_v3, %v264_v41  ;;  %v1671_v43 = vsel %vm290_vm2, %v1654_v33, 128  ;;  %v1677_v45 = vcvt.s32.f32 %v350_v39 }
  0xdc   : > { %v1674_v44 = vsel %vm292_vm3, %v1654_v33, 128  ;;  %325 = vmin.xlane.f32.xlu0 %v1667_v42  ;;  %v336_v46 = vshra.s32 %v1671_v43, 16 }
  0xdd   : > { %v364_v47 = vshra.s32 %v1674_v44, 16  ;;  %v266_v48 = vpop.xlane.xlu0 %265 }
  0xde   : > { %v268_v49 = vpop.xlane.xlu1 %267  ;;  %vm293_vm4 = vcmp.eq.f32.partialorder %v1482_v4, %v266_v48  ;;  %v1682_v50 = vcvt.s32.f32 %v336_v46 }
  0xdf   : > { %vm294_vm5 = vcmp.eq.f32.partialorder %v1485_v5, %v268_v49  ;;  %v1686_v51 = vsel %vm293_vm4, %v1654_v33, 128  ;;  %v1693_v53 = vcvt.s32.f32 %v364_v47 }
  0xe0   : > { %v1689_v52 = vsel %vm294_vm5, %v1654_v33, 128  ;;  %353 = vmin.xlane.f32.xlu0 %v1677_v45  ;;  %339 = vmin.xlane.f32.xlu1 %v1682_v50  ;;  %v378_v54 = vshra.s32 %v1686_v51, 16 }
  0xe1   : > { %v392_v55 = vshra.s32 %v1689_v52, 16  ;;  %v270_v56 = vpop.xlane.xlu0 %269 }
  0xe2   : > { %v272_v57 = vpop.xlane.xlu1 %271  ;;  %vm295_vm6 = vcmp.eq.f32.partialorder %v1494_v6, %v270_v56  ;;  %v1698_v58 = vcvt.s32.f32 %v378_v54 }
  0xe3   : > { %vm296_vm7 = vcmp.eq.f32.partialorder %v1497_v7, %v272_v57  ;;  %v1702_v59 = vsel %vm295_vm6, %v1654_v33, 128  ;;  %v1709_v61 = vcvt.s32.f32 %v392_v55 }
  0xe4   : > { %v1705_v60 = vsel %vm296_vm7, %v1654_v33, 128  ;;  %367 = vmin.xlane.f32.xlu1 %v1693_v53  ;;  %381 = vmin.xlane.f32.xlu0 %v1698_v58  ;;  %v406_v62 = vshra.s32 %v1702_v59, 16 }
  0xe5   : > { %v420_v63 = vshra.s32 %v1705_v60, 16  ;;  %v274_v0 = vpop.xlane.xlu0 %273 }
  0xe6   : > { %v276_v1 = vpop.xlane.xlu1 %275  ;;  %vm297_vm8 = vcmp.eq.f32.partialorder %v1500_v8, %v274_v0  ;;  %v1714_v2 = vcvt.s32.f32 %v406_v62 }
  0xe7   : > { %vm298_vm9 = vcmp.eq.f32.partialorder %v1509_v9, %v276_v1  ;;  %v1718_v3 = vsel %vm297_vm8, %v1654_v33, 128  ;;  %v1725_v5 = vcvt.s32.f32 %v420_v63 }
  0xe8   : > { %v1721_v4 = vsel %vm298_vm9, %v1654_v33, 128  ;;  %395 = vmin.xlane.f32.xlu1 %v1709_v61  ;;  %409 = vmin.xlane.f32.xlu0 %v1714_v2  ;;  %v434_v6 = vshra.s32 %v1718_v3, 16 }
  0xe9   : > { %v448_v7 = vshra.s32 %v1721_v4, 16  ;;  %v278_v8 = vpop.xlane.xlu0 %277 }
  0xea   : > { %v280_v34 = vpop.xlane.xlu1 %279  ;;  %vm299_vm10 = vcmp.eq.f32.partialorder %v1512_v10, %v278_v8  ;;  %v1730_v9 = vcvt.s32.f32 %v434_v6 }
  0xeb   : > { %vm300_vm11 = vcmp.eq.f32.partialorder %v1515_v11, %v280_v34  ;;  %v1734_v35 = vsel %vm299_vm10, %v1654_v33, 128  ;;  %v1741_v39 = vcvt.s32.f32 %v448_v7 }
  0xec   : > { %v1737_v38 = vsel %vm300_vm11, %v1654_v33, 128  ;;  %423 = vmin.xlane.f32.xlu1 %v1725_v5  ;;  %437 = vmin.xlane.f32.xlu0 %v1730_v9  ;;  %v462_v40 = vshra.s32 %v1734_v35, 16 }
  0xed   : > { %v476_v10 = vshra.s32 %v1737_v38, 16  ;;  %v282_v41 = vpop.xlane.xlu0 %281 }
  0xee   : > { %v284_v46 = vpop.xlane.xlu1 %283  ;;  %vm301_vm12 = vcmp.eq.f32.partialorder %v1524_v12, %v282_v41  ;;  %v1746_v11 = vcvt.s32.f32 %v462_v40 }
  0xef   : > { %vm302_vm13 = vcmp.eq.f32.partialorder %v1527_v13, %v284_v46  ;;  %v1750_v47 = vsel %vm301_vm12, %v1654_v33, 128  ;;  %v1757_v49 = vcvt.s32.f32 %v476_v10 }
  0xf0   : > { %v1753_v48 = vsel %vm302_vm13, %v1654_v33, 128  ;;  %451 = vmin.xlane.f32.xlu1 %v1741_v39  ;;  %465 = vmin.xlane.f32.xlu0 %v1746_v11  ;;  %v490_v54 = vshra.s32 %v1750_v47, 16 }
  0xf1   : > { %v504_v12 = vshra.s32 %v1753_v48, 16  ;;  %v286_v55 = vpop.xlane.xlu0 %285 }
  0xf2   : > { %v288_v56 = vpop.xlane.xlu1 %287  ;;  %vm303_vm14 = vcmp.eq.f32.partialorder %v1530_v14, %v286_v55  ;;  %v1762_v13 = vcvt.s32.f32 %v490_v54 }
  0xf3   : > { %vm304_vm15 = vcmp.eq.f32.partialorder %v1541_v15, %v288_v56  ;;  %v1766_v57 = vsel %vm303_vm14, %v1654_v33, 128  ;;  %v1773_v63 = vcvt.s32.f32 %v504_v12 }
  0xf4   : > { %v1769_v62 = vsel %vm304_vm15, %v1654_v33, 128  ;;  %479 = vmin.xlane.f32.xlu1 %v1757_v49  ;;  %493 = vmin.xlane.f32.xlu0 %v1762_v13  ;;  %v518_v0 = vshra.s32 %v1766_v57, 16 }
  0xf5   : > { %v532_v14 = vshra.s32 %v1769_v62, 16  ;;  %v614_v1 = vpop.xlane.xlu0 %613 }
  0xf6   : > { %v616_v6 = vpop.xlane.xlu1 %615  ;;  %vm645_vm0 = vcmp.eq.f32.partialorder %v1544_v16, %v614_v1  ;;  %v1778_v15 = vcvt.s32.f32 %v518_v0 }
  0xf7   : > { %vm646_vm1 = vcmp.eq.f32.partialorder %v1547_v17, %v616_v6  ;;  %v1782_v7 = vsel %vm645_vm0, %v1654_v33, 128  ;;  %v1789_v34 = vcvt.s32.f32 %v532_v14 }
  0xf8   : > { %v1785_v8 = vsel %vm646_vm1, %v1654_v33, 128  ;;  %507 = vmin.xlane.f32.xlu1 %v1773_v63  ;;  %521 = vmin.xlane.f32.xlu0 %v1778_v15  ;;  %v678_v40 = vshra.s32 %v1782_v7, 16 }
  0xf9   : > { %v692_v16 = vshra.s32 %v1785_v8, 16  ;;  %v618_v10 = vpop.xlane.xlu0 %617 }
  0xfa   : > { %v620_v41 = vpop.xlane.xlu1 %619  ;;  %vm647_vm2 = vcmp.eq.f32.partialorder %v1556_v18, %v618_v10  ;;  %v1794_v17 = vcvt.s32.f32 %v678_v40 }
  0xfb   : > { %vm648_vm3 = vcmp.eq.f32.partialorder %v1559_v19, %v620_v41  ;;  %v1798_v46 = vsel %vm647_vm2, %v1654_v33, 128  ;;  %v1805_v12 = vcvt.s32.f32 %v692_v16 }
  0xfc   : > { %v1801_v54 = vsel %vm648_vm3, %v1654_v33, 128  ;;  %535 = vmin.xlane.f32.xlu1 %v1789_v34  ;;  %681 = vmin.xlane.f32.xlu0 %v1794_v17  ;;  %v706_v55 = vshra.s32 %v1798_v46, 16 }
  0xfd   : > { %v720_v18 = vshra.s32 %v1801_v54, 16  ;;  %v622_v56 = vpop.xlane.xlu0 %621 }
  0xfe   : > { %v624_v0 = vpop.xlane.xlu1 %623  ;;  %vm649_vm4 = vcmp.eq.f32.partialorder %v1562_v20, %v622_v56  ;;  %v1810_v19 = vcvt.s32.f32 %v706_v55 }
  0xff   : > { %vm650_vm5 = vcmp.eq.f32.partialorder %v1571_v21, %v624_v0  ;;  %v1814_v14 = vsel %vm649_vm4, %v1654_v33, 128  ;;  %v1821_v6 = vcvt.s32.f32 %v720_v18 }
 0x100   : > { %v1817_v1 = vsel %vm650_vm5, %v1654_v33, 128  ;;  %695 = vmin.xlane.f32.xlu1 %v1805_v12  ;;  %709 = vmin.xlane.f32.xlu0 %v1810_v19  ;;  %v734_v40 = vshra.s32 %v1814_v14, 16 }
 0x101   : > { %v748_v20 = vshra.s32 %v1817_v1, 16  ;;  %v626_v16 = vpop.xlane.xlu0 %625 }
 0x102   : > { %v628_v10 = vpop.xlane.xlu1 %627  ;;  %vm651_vm6 = vcmp.eq.f32.partialorder %v1574_v22, %v626_v16  ;;  %v1826_v21 = vcvt.s32.f32 %v734_v40 }
 0x103   : > { %vm652_vm7 = vcmp.eq.f32.partialorder %v1577_v23, %v628_v10  ;;  %v1830_v41 = vsel %vm651_vm6, %v1654_v33, 128  ;;  %v1837_v18 = vcvt.s32.f32 %v748_v20 }
 0x104   : > { %v1833_v55 = vsel %vm652_vm7, %v1654_v33, 128  ;;  %723 = vmin.xlane.f32.xlu1 %v1821_v6  ;;  %737 = vmin.xlane.f32.xlu0 %v1826_v21  ;;  %v762_v56 = vshra.s32 %v1830_v41, 16 }
 0x105   : > { %2585 = vst [vmem:[#allocation13_spill] sm:$0xff] %v1837_v18  ;;  %v776_v22 = vshra.s32 %v1833_v55, 16  ;;  %v630_v0 = vpop.xlane.xlu0 %629 }
 0x106   : > { %v632_v40 = vpop.xlane.xlu1 %631  ;;  %vm653_vm8 = vcmp.eq.f32.partialorder %v1586_v24, %v630_v0  ;;  %v1842_v23 = vcvt.s32.f32 %v762_v56 }
 0x107   : > { %vm654_vm9 = vcmp.eq.f32.partialorder %v1589_v25, %v632_v40  ;;  %v1846_v16 = vsel %vm653_vm8, %v1654_v33, 128  ;;  %v1853_v20 = vcvt.s32.f32 %v776_v22 }
 0x108   : > { %v1849_v10 = vsel %vm654_vm9, %v1654_v33, 128  ;;  %751 = vmin.xlane.f32.xlu1 %v1837_v18  ;;  %765 = vmin.xlane.f32.xlu0 %v1842_v23  ;;  %v790_v32 = vshra.s32 %v1846_v16, 16 }
 0x109   : > { %2586 = vst [vmem:[#allocation14_spill] sm:$0xff] %v1849_v10  ;;  %2587 = vst [vmem:[#allocation15_spill] sm:$0xff] %v1853_v20  ;;  %v804_v24 = vshra.s32 %v1849_v10, 16  ;;  %v634_v56 = vpop.xlane.xlu0 %633 }
 0x10a   : > { %v636_v0 = vpop.xlane.xlu1 %635  ;;  %vm655_vm10 = vcmp.eq.f32.partialorder %v1592_v26, %v634_v56  ;;  %v1858_v25 = vcvt.s32.f32 %v790_v32 }
 0x10b   : > { %vm656_vm11 = vcmp.eq.f32.partialorder %v1603_v27, %v636_v0  ;;  %v1862_v40 = vsel %vm655_vm10, %v1654_v33, 128  ;;  %v1869_v22 = vcvt.s32.f32 %v804_v24 }
 0x10c   : > { %v1865_v18 = vsel %vm656_vm11, %v1654_v33, 128  ;;  %779 = vmin.xlane.f32.xlu1 %v1853_v20  ;;  %793 = vmin.xlane.f32.xlu0 %v1858_v25  ;;  %v818_v10 = vshra.s32 %v1862_v40, 16 }
 0x10d   : > { %2588 = vst [vmem:[#allocation16_spill] sm:$0xff] %v1865_v18  ;;  %2589 = vst [vmem:[#allocation17_spill] sm:$0xff] %v1869_v22  ;;  %v832_v26 = vshra.s32 %v1865_v18, 16  ;;  %v638_v32 = vpop.xlane.xlu0 %637 }
 0x10e   : > { %v640_v56 = vpop.xlane.xlu1 %639  ;;  %vm657_vm12 = vcmp.eq.f32.partialorder %v1606_v28, %v638_v32  ;;  %v1874_v27 = vcvt.s32.f32 %v818_v10 }
 0x10f   : > { %vm658_vm13 = vcmp.eq.f32.partialorder %v1609_v29, %v640_v56  ;;  %v1878_v0 = vsel %vm657_vm12, %v1654_v33, 128  ;;  %v1885_v24 = vcvt.s32.f32 %v832_v26 }
 0x110   : > { %v1881_v20 = vsel %vm658_vm13, %v1654_v33, 128  ;;  %807 = vmin.xlane.f32.xlu1 %v1869_v22  ;;  %821 = vmin.xlane.f32.xlu0 %v1874_v27  ;;  %v846_v18 = vshra.s32 %v1878_v0, 16 }
 0x111   : > { %2590 = vst [vmem:[#allocation18_spill] sm:$0xff] %v1881_v20  ;;  %v860_v28 = vshra.s32 %v1881_v20, 16  ;;  %v642_v10 = vpop.xlane.xlu0 %641 }
 0x112   : > { %v644_v32 = vpop.xlane.xlu1 %643  ;;  %vm659_vm14 = vcmp.eq.f32.partialorder %v1618_v30, %v642_v10  ;;  %v1890_v29 = vcvt.s32.f32 %v846_v18  ;;  %v349_v10 = vand.u32 65535, %v1662_v37 }
 0x113   : > { %vm660_vm15 = vcmp.eq.f32.partialorder %v1621_v31, %v644_v32  ;;  %v1894_v56 = vsel %vm659_vm14, %v1654_v33, 128  ;;  %v1901_v26 = vcvt.s32.f32 %v860_v28  ;;  %v335_v28 = vand.u32 65535, %v1671_v43 }
 0x114   : > { %2591 = vst [vmem:[#allocation19_spill] sm:$0xff] %v1890_v29  ;;  %v1897_v22 = vsel %vm660_vm15, %v1654_v33, 128  ;;  %835 = vmin.xlane.f32.xlu1 %v1885_v24  ;;  %849 = vmin.xlane.f32.xlu0 %v1890_v29  ;;  %v874_v20 = vshra.s32 %v1894_v56, 16  ;;  %v321_v33 = vand.u32 65535, %v1659_v36  ;;  %v351_v37 = vcvt.s32.f32 %v349_v10 }
 0x115   : > { %2592 = vst [vmem:[#allocation20_spill] sm:$0xff] %v1901_v26  ;;  %v888_v30 = vshra.s32 %v1897_v22, 16  ;;  %v337_v36 = vcvt.s32.f32 %v335_v28 }
 0x116   : > { %v1905_v18 = vcvt.s32.f32 %v874_v20  ;;  %v323_v29 = vcvt.s32.f32 %v321_v33 }
 0x117   : > { %v1909_v31 = vcvt.s32.f32 %v888_v30  ;;  %v377_v30 = vand.u32 65535, %v1686_v51  ;;  %v405_v51 = vand.u32 65535, %v1702_v59  ;;  %v433_v59 = vand.u32 65535, %v1718_v3 }
 0x118   : > { %2593 = vst [vmem:[#allocation21_spill] sm:$0xff] %v1905_v18  ;;  %863 = vmin.xlane.f32.xlu1 %v1901_v26  ;;  %877 = vmin.xlane.f32.xlu0 %v1905_v18  ;;  %v363_v18 = vand.u32 65535, %v1674_v44  ;;  %v391_v44 = vand.u32 65535, %v1689_v52  ;;  %v419_v52 = vand.u32 65535, %v1705_v60  ;;  %v447_v60 = vand.u32 65535, %v1721_v4 }
 0x119   : > { %2594 = vst [vmem:[#allocation22_spill] sm:$0xff] %v1909_v31  ;;  %v379_v10 = vcvt.s32.f32 %v377_v30  ;;  %v407_v30 = vcvt.s32.f32 %v405_v51  ;;  %v461_v3 = vand.u32 65535, %v1734_v35  ;;  %v475_v4 = vand.u32 65535, %v1737_v38 }
 0x11a   : > { %v365_v28 = vcvt.s32.f32 %v363_v18  ;;  %v393_v18 = vcvt.s32.f32 %v391_v44  ;;  %v435_v44 = vcvt.s32.f32 %v433_v59  ;;  %v489_v35 = vand.u32 65535, %v1750_v47 }
 0x11b   : > { %v503_v38 = vand.u32 65535, %v1753_v48  ;;  %v517_v47 = vand.u32 65535, %v1766_v57  ;;  %v477_v59 = vcvt.s32.f32 %v475_v4  ;;  %v531_v48 = vand.u32 65535, %v1769_v62 }
 0x11c   : > { %891 = vmin.xlane.f32.xlu1 %v1909_v31  ;;  %v677_v57 = vand.u32 65535, %v1782_v7  ;;  %v691_v62 = vand.u32 65535, %v1785_v8  ;;  %v705_v7 = vand.u32 65535, %v1798_v46  ;;  %v719_v8 = vand.u32 65535, %v1801_v54 }
 0x11d   : > { %v733_v46 = vand.u32 65535, %v1814_v14  ;;  %v747_v54 = vand.u32 65535, %v1817_v1  ;;  %v761_v14 = vand.u32 65535, %v1830_v41  ;;  %v775_v1 = vand.u32 65535, %v1833_v55 }
 0x11e   : > { %v789_v41 = vand.u32 65535, %v1846_v16  ;;  %v817_v16 = vand.u32 65535, %v1862_v40  ;;  %v845_v40 = vand.u32 65535, %v1878_v0  ;;  %v873_v0 = vand.u32 65535, %v1894_v56 }
 0x169   : > { %v1915_v32 = vpop.xlane.xlu0 %325 }
 0x16a   : > { %vm327_vm0 = vcmp.eq.f32.partialorder %v1667_v42, %v1915_v32 }
 0x16b   : > { %v328_v20 = vsel %vm327_vm0, %v323_v29, inf }
 0x16c   : > { %329 = vmin.xlane.f32.xlu0 %v328_v20 }
 0x16d   : > { %v1921_v26 = vpop.xlane.xlu1 %339  ;;  %v1923_v31 = vpop.xlane.xlu0 %353 }
 0x16e   : > { %vm341_vm1 = vcmp.eq.f32.partialorder %v1682_v50, %v1921_v26  ;;  %vm355_vm2 = vcmp.eq.f32.partialorder %v1677_v45, %v1923_v31 }
 0x16f   : > { %v342_v43 = vsel %vm341_vm1, %v337_v36, inf  ;;  %v356_v42 = vsel %vm355_vm2, %v351_v37, inf }
 0x170   : > { %343 = vmin.xlane.f32.xlu1 %v342_v43  ;;  %357 = vmin.xlane.f32.xlu0 %v356_v42  ;;  %v421_v42 = vcvt.s32.f32 %v419_v52 }
 0x171   : > { %v1931_v29 = vpop.xlane.xlu1 %367  ;;  %v1933_v33 = vpop.xlane.xlu0 %381 }
 0x172   : > { %vm369_vm3 = vcmp.eq.f32.partialorder %v1693_v53, %v1931_v29  ;;  %vm383_vm4 = vcmp.eq.f32.partialorder %v1698_v58, %v1933_v33 }
 0x173   : > { %v370_v45 = vsel %vm369_vm3, %v365_v28, inf  ;;  %v384_v50 = vsel %vm383_vm4, %v379_v10, inf  ;;  %v449_v10 = vcvt.s32.f32 %v447_v60  ;;  %v519_v60 = vcvt.s32.f32 %v517_v47 }
 0x174   : > { %371 = vmin.xlane.f32.xlu1 %v370_v45  ;;  %385 = vmin.xlane.f32.xlu0 %v384_v50  ;;  %v463_v45 = vcvt.s32.f32 %v461_v3 }
 0x175   : > { %v1941_v20 = vpop.xlane.xlu1 %395  ;;  %v1943_v36 = vpop.xlane.xlu0 %409 }
 0x176   : > { %vm397_vm5 = vcmp.eq.f32.partialorder %v1709_v61, %v1941_v20  ;;  %vm411_vm6 = vcmp.eq.f32.partialorder %v1714_v2, %v1943_v36 }
 0x177   : > { %v398_v53 = vsel %vm397_vm5, %v393_v18, inf  ;;  %v412_v58 = vsel %vm411_vm6, %v407_v30, inf  ;;  %v491_v18 = vcvt.s32.f32 %v489_v35  ;;  %v693_v35 = vcvt.s32.f32 %v691_v62 }
 0x178   : > { %399 = vmin.xlane.f32.xlu1 %v398_v53  ;;  %413 = vmin.xlane.f32.xlu0 %v412_v58  ;;  %v505_v58 = vcvt.s32.f32 %v503_v38  ;;  %v735_v38 = vcvt.s32.f32 %v733_v46  ;;  %v2600_v46 = vld [vmem:[#allocation17_spill] sm:$0xff] }
 0x179   : > { %v1951_v37 = vpop.xlane.xlu1 %423  ;;  %v1953_v43 = vpop.xlane.xlu0 %437 }
 0x17a   : > { %vm425_vm7 = vcmp.eq.f32.partialorder %v1725_v5, %v1951_v37  ;;  %vm439_vm8 = vcmp.eq.f32.partialorder %v1730_v9, %v1953_v43 }
 0x17b   : > { %v426_v61 = vsel %vm425_vm7, %v421_v42, inf  ;;  %v440_v2 = vsel %vm439_vm8, %v435_v44, inf  ;;  %v533_v44 = vcvt.s32.f32 %v531_v48  ;;  %v2597_v48 = vld [vmem:[#allocation14_spill] sm:$0xff] }
 0x17c   : > { %427 = vmin.xlane.f32.xlu1 %v426_v61  ;;  %441 = vmin.xlane.f32.xlu0 %v440_v2  ;;  %v679_v61 = vcvt.s32.f32 %v677_v57  ;;  %v803_v55 = vand.u32 65535, %v2597_v48  ;;  %v2606_v48 = vld [vmem:[#allocation22_spill] sm:$0xff] }
 0x17d   : > { %v1961_v51 = vpop.xlane.xlu1 %451  ;;  %v1963_v28 = vpop.xlane.xlu0 %465 }
 0x17e   : > { %vm453_vm9 = vcmp.eq.f32.partialorder %v1741_v39, %v1961_v51  ;;  %vm467_vm10 = vcmp.eq.f32.partialorder %v1746_v11, %v1963_v28 }
 0x17f   : > { %v454_v5 = vsel %vm453_vm9, %v449_v10, inf  ;;  %v468_v9 = vsel %vm467_vm10, %v463_v45, inf  ;;  %v707_v10 = vcvt.s32.f32 %v705_v7  ;;  %v2599_v7 = vld [vmem:[#allocation16_spill] sm:$0xff] }
 0x180   : > { %455 = vmin.xlane.f32.xlu1 %v454_v5  ;;  %469 = vmin.xlane.f32.xlu0 %v468_v9  ;;  %v721_v9 = vcvt.s32.f32 %v719_v8  ;;  %v819_v8 = vcvt.s32.f32 %v817_v16 }
 0x181   : > { %v1971_v50 = vpop.xlane.xlu1 %479  ;;  %v1973_v52 = vpop.xlane.xlu0 %493 }
 0x182   : > { %vm481_vm11 = vcmp.eq.f32.partialorder %v1757_v49, %v1971_v50  ;;  %vm495_vm12 = vcmp.eq.f32.partialorder %v1762_v13, %v1973_v52 }
 0x183   : > { %v482_v39 = vsel %vm481_vm11, %v477_v59, inf  ;;  %v496_v11 = vsel %vm495_vm12, %v491_v18, inf  ;;  %v749_v18 = vcvt.s32.f32 %v747_v54 }
 0x184   : > { %483 = vmin.xlane.f32.xlu1 %v482_v39  ;;  %497 = vmin.xlane.f32.xlu0 %v496_v11  ;;  %v763_v39 = vcvt.s32.f32 %v761_v14  ;;  %v2596_v11 = vld [vmem:[#allocation13_spill] sm:$0xff] }
 0x185   : > { %v1981_v30 = vpop.xlane.xlu1 %507  ;;  %v1983_v53 = vpop.xlane.xlu0 %521 }
 0x186   : > { %vm509_vm13 = vcmp.eq.f32.partialorder %v1773_v63, %v1981_v30  ;;  %vm523_vm14 = vcmp.eq.f32.partialorder %v1778_v15, %v1983_v53 }
 0x187   : > { %v510_v49 = vsel %vm509_vm13, %v505_v58, inf  ;;  %v524_v13 = vsel %vm523_vm14, %v519_v60, inf  ;;  %v777_v60 = vcvt.s32.f32 %v775_v1 }
 0x188   : > { %511 = vmin.xlane.f32.xlu1 %v510_v49  ;;  %525 = vmin.xlane.f32.xlu0 %v524_v13  ;;  %v791_v49 = vcvt.s32.f32 %v789_v41  ;;  %v2598_v13 = vld [vmem:[#allocation15_spill] sm:$0xff] }
 0x189   : > { %v1991_v3 = vpop.xlane.xlu1 %535  ;;  %v1993_v42 = vpop.xlane.xlu0 %681 }
 0x18a   : > { %2595 = vst [vmem:[#allocation23_spill] sm:$0xff] %v1991_v3  ;;  %vm537_vm15 = vcmp.eq.f32.partialorder %v1789_v34, %v1991_v3  ;;  %vm683_vm0 = vcmp.eq.f32.partialorder %v1794_v17, %v1993_v42 }
 0x18b   : > { %v538_v63 = vsel %vm537_vm15, %v533_v44, inf  ;;  %v684_v15 = vsel %vm683_vm0, %v679_v61, inf  ;;  %v831_v44 = vand.u32 65535, %v2599_v7 }
 0x18c   : > { %539 = vmin.xlane.f32.xlu1 %v538_v63  ;;  %685 = vmin.xlane.f32.xlu0 %v684_v15  ;;  %v805_v15 = vcvt.s32.f32 %v803_v55 }
 0x18d   : > { %v2001_v2 = vpop.xlane.xlu1 %695  ;;  %v2003_v4 = vpop.xlane.xlu0 %709  ;;  %v833_v14 = vcvt.s32.f32 %v831_v44 }
 0x18e   : > { %vm697_vm1 = vcmp.eq.f32.partialorder %v1805_v12, %v2001_v2  ;;  %vm711_vm2 = vcmp.eq.f32.partialorder %v1810_v19, %v2003_v4 }
 0x18f   : > { %v698_v34 = vsel %vm697_vm1, %v693_v35, inf  ;;  %v712_v17 = vsel %vm711_vm2, %v707_v10, inf  ;;  %v2601_v10 = vld [vmem:[#allocation18_spill] sm:$0xff] }
 0x190   : > { %699 = vmin.xlane.f32.xlu1 %v698_v34  ;;  %713 = vmin.xlane.f32.xlu0 %v712_v17  ;;  %v859_v34 = vand.u32 65535, %v2601_v10  ;;  %v416_v10 = vcvt.f32.s32 %v1943_v36 }
 0x191   : > { %v2011_v45 = vpop.xlane.xlu1 %723  ;;  %v2013_v5 = vpop.xlane.xlu0 %737 }
 0x192   : > { %vm725_vm3 = vcmp.eq.f32.partialorder %v1821_v6, %v2011_v45  ;;  %vm739_vm4 = vcmp.eq.f32.partialorder %v1826_v21, %v2013_v5  ;;  %v861_v41 = vcvt.s32.f32 %v859_v34 }
 0x193   : > { %v726_v12 = vsel %vm725_vm3, %v721_v9, inf  ;;  %v740_v19 = vsel %vm739_vm4, %v735_v38, inf  ;;  %v847_v9 = vcvt.s32.f32 %v845_v40  ;;  %v2602_v38 = vld [vmem:[#allocation19_spill] sm:$0xff]  ;;  %v2087_v40 = vstv %s1132_s15 }
 0x194   : > { %727 = vmin.xlane.f32.xlu1 %v726_v12  ;;  %741 = vmin.xlane.f32.xlu0 %v740_v19  ;;  %v887_v19 = vand.u32 65535, %v1897_v22 }
 0x195   : > { %v2021_v47 = vpop.xlane.xlu1 %751  ;;  %v2023_v59 = vpop.xlane.xlu0 %765 }
 0x196   : > { %vm753_vm5 = vcmp.eq.f32.partialorder %v2596_v11, %v2021_v47  ;;  %vm767_vm6 = vcmp.eq.f32.partialorder %v1842_v23, %v2023_v59  ;;  %v889_v22 = vcvt.s32.f32 %v887_v19 }
 0x197   : > { %v754_v6 = vsel %vm753_vm5, %v749_v18, inf  ;;  %v768_v21 = vsel %vm767_vm6, %v763_v39, inf  ;;  %v875_v18 = vcvt.s32.f32 %v873_v0  ;;  %v2603_v39 = vld [vmem:[#allocation20_spill] sm:$0xff]  ;;  %v2101_v0 = vstv %s545_s5 }
 0x198   : > { %755 = vmin.xlane.f32.xlu1 %v754_v6  ;;  %769 = vmin.xlane.f32.xlu0 %v768_v21  ;;  %vm935_vm6 = vcmask 7168  }
 0x199   : > { %v2031_v57 = vpop.xlane.xlu1 %779  ;;  %v2033_v58 = vpop.xlane.xlu0 %793 }
 0x19a   : > { %vm781_vm7 = vcmp.eq.f32.partialorder %v2598_v13, %v2031_v57  ;;  %vm795_vm8 = vcmp.eq.f32.partialorder %v1858_v25, %v2033_v58  ;;  %v332_v13 = vcvt.f32.s32 %v1915_v32 }
 0x19b   : > { %v782_v23 = vsel %vm781_vm7, %v777_v60, inf  ;;  %v796_v62 = vsel %vm795_vm8, %v791_v49, inf  ;;  %vm952_vm7 = vcmask 15360  }
 0x19c   : > { %783 = vmin.xlane.f32.xlu1 %v782_v23  ;;  %797 = vmin.xlane.f32.xlu0 %v796_v62  ;;  %v2607_v23 = vlaneseq  ;;  %v2094_v32 = vshll.u32 %v332_v13, 16 }
 0x19d   : > { %v2041_v61 = vpop.xlane.xlu1 %807  ;;  %v2043_v63 = vpop.xlane.xlu0 %821 }
 0x19e   : > { %vm809_vm9 = vcmp.eq.f32.partialorder %v2600_v46, %v2041_v61  ;;  %vm823_vm10 = vcmp.eq.f32.partialorder %v1874_v27, %v2043_v63  ;;  %v2081_v62 = vshrl.u32 %v2607_v23, 7  ;;  %v374_v46 = vcvt.f32.s32 %v1931_v29 }
 0x19f   : > { %v810_v25 = vsel %vm809_vm9, %v805_v15, inf  ;;  %v824_v35 = vsel %vm823_vm10, %v819_v8, inf  ;;  %v346_v15 = vcvt.f32.s32 %v1921_v26  ;;  %v360_v8 = vcvt.f32.s32 %v1923_v31 }
 0x1a0   : > { %811 = vmin.xlane.f32.xlu1 %v810_v25  ;;  %825 = vmin.xlane.f32.xlu0 %v824_v35  ;;  %v388_v25 = vcvt.f32.s32 %v1933_v33  ;;  %v402_v35 = vcvt.f32.s32 %v1941_v20  ;;  %v2099_v34 = vadd.s32 %v2087_v40, %v2081_v62  ;;  %v430_v31 = vcvt.f32.s32 %v1951_v37 }
 0x1a1   : > { %v2051_v17 = vpop.xlane.xlu1 %835  ;;  %v2053_v54 = vpop.xlane.xlu0 %849  ;;  %v444_v29 = vcvt.f32.s32 %v1953_v43  ;;  %v458_v33 = vcvt.f32.s32 %v1961_v51  ;;  %v472_v20 = vcvt.f32.s32 %v1963_v28  ;;  %v2113_v36 = vshll.u32 %v360_v8, 16 }
 0x1a2   : > { %vm837_vm11 = vcmp.eq.f32.partialorder %v1885_v24, %v2051_v17  ;;  %vm851_vm12 = vcmp.eq.f32.partialorder %v2602_v38, %v2053_v54  ;;  %v2604_v24 = vld [vmem:[#allocation21_spill] sm:$0xff]  ;;  %v2115_v38 = vshll.u32 %v374_v46, 16  ;;  %v2120_v19 = vshll.u32 %v402_v35, 16 }
 0x1a3   : > { %v838_v27 = vsel %vm837_vm11, %v833_v14, inf  ;;  %v852_v12 = vsel %vm851_vm12, %v847_v9, inf  ;;  %v2111_v9 = vshll.u32 %v346_v15, 16  ;;  %v486_v37 = vcvt.f32.s32 %v1971_v50 }
 0x1a4   : > { %839 = vmin.xlane.f32.xlu1 %v838_v27  ;;  %853 = vmin.xlane.f32.xlu0 %v852_v12  ;;  %v190_v27 = vadd.s32 8, %v2081_v62  ;;  %v2118_v12 = vshll.u32 %v388_v25, 16  ;;  %v191_v43 = vadd.s32 16, %v2081_v62  ;;  %v500_v51 = vcvt.f32.s32 %v1973_v52 }
 0x1a5   : > { %v2060_v1 = vpop.xlane.xlu1 %863  ;;  %v2062_v56 = vpop.xlane.xlu0 %877  ;;  %v192_v28 = vadd.s32 24, %v2081_v62  ;;  %v2139_v50 = vshll.u32 %v472_v20, 16  ;;  %v528_v52 = vcvt.f32.s32 %v1983_v53  ;;  %v194_v13 = vadd.s32 40, %v2081_v62 }
 0x1a6   : > { %vm865_vm13 = vcmp.eq.f32.partialorder %v2603_v39, %v2060_v1  ;;  %vm879_vm14 = vcmp.eq.f32.partialorder %v2604_v24, %v2062_v56  ;;  %v2147_v23 = vshll.u32 %v486_v37, 16  ;;  %v688_v15 = vcvt.f32.s32 %v1993_v42 }
 0x1a7   : > { %v866_v11 = vsel %vm865_vm13, %v861_v41, inf  ;;  %v880_v6 = vsel %vm879_vm14, %v875_v18, inf  ;;  %v2124_v41 = vshll.u32 %v416_v10, 16  ;;  %v193_v18 = vadd.s32 32, %v2081_v62  ;;  %2608 = vst [vmem:[#allocation14_spill] sm:$0xff] %v2139_v50 }
 0x1a8   : > { %867 = vmin.xlane.f32.xlu1 %v866_v11  ;;  %881 = vmin.xlane.f32.xlu0 %v880_v6  ;;  %v2133_v11 = vshll.u32 %v430_v31, 16  ;;  %v2135_v6 = vshll.u32 %v444_v29, 16  ;;  %2609 = vst [vmem:[#allocation15_spill] sm:$0xff] %v2147_v23  ;;  %v2151_v8 = vadd.s32 %v2087_v40, %v191_v43  ;;  %v195_v46 = vadd.s32 48, %v2081_v62 }
 0x1a9   : > { %v2068_v21 = vpop.xlane.xlu1 %891  ;;  %v2154_v25 = vshll.u32 %v500_v51, 16  ;;  %v2160_v53 = vadd.s32 %v2087_v40, %v193_v18  ;;  %v196_v35 = vadd.s32 56, %v2081_v62  ;;  %v702_v42 = vcvt.f32.s32 %v2001_v2 }
 0x1aa   : > { %2605 = vst [vmem:[#allocation13_spill] sm:$0xff] %v2068_v21  ;;  %vm893_vm15 = vcmp.eq.f32.partialorder %v2606_v48, %v2068_v21  ;;  %v514_v48 = vcvt.f32.s32 %v1981_v30  ;;  %v2157_v30 = vadd.s32 %v2087_v40, %v192_v28  ;;  %v716_v29 = vcvt.f32.s32 %v2003_v4 }
 0x1ab   : > { %v894_v55 = vsel %vm893_vm15, %v889_v22, inf  ;;  %v2137_v22 = vshll.u32 %v458_v33, 16  ;;  %2610 = vst [vmem:[#allocation16_spill] sm:$0xff] %v2154_v25  ;;  %v197_v33 = vadd.s32 64, %v2081_v62  ;;  %v198_v20 = vadd.s32 72, %v2081_v62 }
 0x1ac   : > { %895 = vmin.xlane.f32.xlu1 %v894_v55  ;;  %v2144_v55 = vadd.s32 %v2087_v40, %v190_v27  ;;  %v2173_v27 = vshll.u32 %v514_v48, 16  ;;  %v2175_v37 = vshll.u32 %v528_v52, 16  ;;  %v2179_v51 = vadd.s32 %v2087_v40, %v194_v13 }
 0x1ad   : > { %v2182_v2 = vshll.u32 %v688_v15, 16  ;;  %v730_v4 = vcvt.f32.s32 %v2011_v45  ;;  %v2186_v28 = vadd.s32 %v2087_v40, %v195_v46  ;;  %v199_v18 = vadd.s32 80, %v2081_v62 }
 0x1ae   : > { %2611 = vst [vmem:[#allocation17_spill] sm:$0xff] %v2173_v27  ;;  %2612 = vst [vmem:[#allocation18_spill] sm:$0xff] %v2175_v37  ;;  %v744_v48 = vcvt.f32.s32 %v2013_v5  ;;  %v2191_v52 = vadd.s32 %v2087_v40, %v196_v35  ;;  %v200_v43 = vadd.s32 88, %v2081_v62  ;;  %v201_v3 = vadd.s32 96, %v2081_v62 }
 0x1af   : > { %v2199_v37 = vshll.u32 %v702_v42, 16  ;;  %v2201_v45 = vshll.u32 %v716_v29, 16  ;;  %v2204_v46 = vadd.s32 %v2087_v40, %v197_v33  ;;  %v2207_v5 = vadd.s32 %v2087_v40, %v198_v20 }
 0x1b0   : > { %v758_v35 = vcvt.f32.s32 %v2021_v47  ;;  %v772_v27 = vcvt.f32.s32 %v2023_v59  ;;  %vm547_vm0 = vcmp.lt.s32.totalorder %v2099_v34, %v2101_v0  ;;  %v202_v42 = vadd.s32 104, %v2081_v62 }
 0x1b1   : > { %v203_v29 = vadd.s32 112, %v2081_v62  ;;  %v2221_v33 = vshll.u32 %v730_v4, 16  ;;  %v786_v20 = vcvt.f32.s32 %v2031_v57  ;;  %v800_v21 = vcvt.f32.s32 %v2033_v58 }
 0x1b2   : > { %v2226_v47 = vadd.s32 %v2087_v40, %v199_v18  ;;  %v2228_v59 = vshll.u32 %v744_v48, 16  ;;  %v2231_v25 = vadd.s32 %v2087_v40, %v200_v43  ;;  %v2234_v23 = vadd.s32 %v2087_v40, %v201_v3 }
 0x1b3   : > { %v204_v50 = vadd.s32 120, %v2081_v62  ;;  %v814_v57 = vcvt.f32.s32 %v2041_v61  ;;  %v828_v58 = vcvt.f32.s32 %v2043_v63  ;;  %vm548_vm1 = vcmp.lt.s32.totalorder %v2144_v55, %v2101_v0 }
 0x1b4   : > { %vm549_vm2 = vcmp.lt.s32.totalorder %v2151_v8, %v2101_v0  ;;  %v2255_v3 = vstv %s2171_s16  ;;  %v2257_v43 = vshll.u32 %v758_v35, 16  ;;  %v2259_v62 = vshll.u32 %v772_v27, 16 }
 0x1b5   : > { %v2262_v61 = vadd.s32 %v2087_v40, %v202_v42  ;;  %v2265_v63 = vadd.s32 %v2087_v40, %v203_v29  ;;  %v2269_v48 = vshll.u32 %v800_v21, 16  ;;  %vm550_vm3 = vcmp.lt.s32.totalorder %v2157_v30, %v2101_v0 }
 0x1b6   : > { %v2278_v42 = vadd.s32 %v2087_v40, %v204_v50  ;;  %vm903_vm4 = vcmp.lt.s32.totalorder %v2099_v34, %v2255_v3  ;;  %vm551_vm5 = vcmp.lt.s32.totalorder %v2160_v53, %v2101_v0  ;;  %vm904_vm8 = vcmp.lt.s32.totalorder %v2144_v55, %v2255_v3 }
 0x1b7   : > { %vm905_vm9 = vcmp.lt.s32.totalorder %v2151_v8, %v2255_v3  ;;  %vm552_vm10 = vcmp.lt.s32.totalorder %v2179_v51, %v2101_v0  ;;  %vm906_vm11 = vcmp.lt.s32.totalorder %v2157_v30, %v2255_v3  ;;  %vm553_vm12 = vcmp.lt.s32.totalorder %v2186_v28, %v2101_v0 }
 0x1b8   : > { %vm907_vm13 = vcmp.lt.s32.totalorder %v2160_v53, %v2255_v3  ;;  %vm554_vm14 = vcmp.lt.s32.totalorder %v2191_v52, %v2101_v0  ;;  %vm555_vm15 = vcmp.lt.s32.totalorder %v2204_v46, %v2101_v0 }
 0x1f9   : > { %v2072_v16 = vpop.xlane.xlu0 %329 }
 0x1fa   : > { %v331_v18 = vcvt.f32.s32 %v2072_v16  ;;  %v2267_v16 = vshll.u32 %v786_v20, 16  ;;  %v2284_v20 = vshll.u32 %v814_v57, 16 }
 0x1fd   : > { %v2074_v60 = vpop.xlane.xlu1 %343  ;;  %v2076_v49 = vpop.xlane.xlu0 %357 }
 0x1fe   : > { %v345_v35 = vcvt.f32.s32 %v2074_v60  ;;  %v359_v27 = vcvt.f32.s32 %v2076_v49 }
 0x200   : > { %v348_v57 = vadd.s32 %v2111_v9, %v345_v35  ;;  %v884_v35 = vcvt.f32.s32 %v2062_v56 }
 0x201   : > { %v2083_v7 = vpop.xlane.xlu1 %371  ;;  %v2085_v44 = vpop.xlane.xlu0 %385 }
 0x202   : > { %v373_v50 = vcvt.f32.s32 %v2083_v7 }
 0x205   : > { %v2103_v14 = vpop.xlane.xlu1 %399  ;;  %v2105_v26 = vpop.xlane.xlu0 %413 }
 0x209   : > { %v2129_v39 = vpop.xlane.xlu1 %427  ;;  %v2131_v24 = vpop.xlane.xlu0 %441 }
 0x20d   : > { %v2163_v10 = vpop.xlane.xlu1 %455  ;;  %v2165_v31 = vpop.xlane.xlu0 %469 }
 0x211   : > { %v2194_v13 = vpop.xlane.xlu1 %483  ;;  %v2197_v15 = vpop.xlane.xlu0 %497 }
 0x212   : > { %2613 = vst [vmem:[#allocation19_spill] sm:$0xff] %v2197_v15 }
 0x215   : > { %v2236_v15 = vpop.xlane.xlu1 %511  ;;  %v2238_v4 = vpop.xlane.xlu0 %525 }
 0x216   : > { %2615 = vst [vmem:[#allocation20_spill] sm:$0xff] %v2236_v15  ;;  %2616 = vst [vmem:[#allocation21_spill] sm:$0xff] %v2238_v4  ;;  %v842_v4 = vcvt.f32.s32 %v2051_v17  ;;  %v856_v15 = vcvt.f32.s32 %v2053_v54  ;;  %v2286_v17 = vshll.u32 %v828_v58, 16  ;;  %v334_v54 = vadd.s32 %v2094_v32, %v331_v18 }
 0x217   : > { %v362_v58 = vadd.s32 %v2113_v36, %v359_v27  ;;  %v387_v18 = vcvt.f32.s32 %v2085_v44 }
 0x218   : > { %v2296_v49 = vshll.u32 %v842_v4, 16  ;;  %v2298_v40 = vshll.u32 %v856_v15, 16  ;;  %v563_v7 = vsel %vm547_vm0, %v334_v54, 112  ;;  %v401_v54 = vcvt.f32.s32 %v2103_v14 }
 0x219   : > { %v2280_v29 = vpop.xlane.xlu1 %539  ;;  %v686_v21 = vpop.xlane.xlu0 %685  ;;  %v565_v56 = vsel %vm549_vm2, %v362_v58, 112  ;;  %v2353_v58 = vshll.u32 %v884_v35, 16  ;;  %vm556_vm0 = vcmp.lt.s32.totalorder %v2207_v5, %v2101_v0  ;;  %vm908_vm2 = vcmp.lt.s32.totalorder %v2179_v51, %v2255_v3 }
 0x21a   : > { %v687_v60 = vcvt.f32.s32 %v686_v21  ;;  %v376_v21 = vadd.s32 %v2115_v38, %v373_v50  ;;  %v415_v38 = vcvt.f32.s32 %v2105_v26  ;;  %v404_v55 = vadd.s32 %v2120_v19, %v401_v54 }
 0x21b   : > { %v485_v51 = vcvt.f32.s32 %v2194_v13 }
 0x21c   : > { %v690_v32 = vadd.s32 %v2182_v2, %v687_v60  ;;  %v870_v2 = vcvt.f32.s32 %v2060_v1  ;;  %v564_v1 = vsel %vm548_vm1, %v348_v57, 112  ;;  %vm557_vm1 = vcmp.lt.s32.totalorder %v2226_v47, %v2101_v0 }
 0x21d   : > { %v700_v15 = vpop.xlane.xlu1 %699  ;;  %v714_v4 = vpop.xlane.xlu0 %713  ;;  %v568_v30 = vsel %vm552_vm10, %v404_v55, 112  ;;  %vm560_vm10 = vcmp.lt.s32.totalorder %v2262_v61, %v2101_v0 }
 0x21e   : > { %v919_v44 = vsel %vm903_vm4, %v690_v32, 112  ;;  %v701_v9 = vcvt.f32.s32 %v700_v15  ;;  %v715_v36 = vcvt.f32.s32 %v714_v4  ;;  %v390_v32 = vadd.s32 %v2118_v12, %v387_v18 }
 0x21f   : > { %v936_v27 = vsel %vm935_vm6, %v563_v7, %v919_v44  ;;  %v2351_v26 = vshll.u32 %v870_v2, 16  ;;  %v566_v4 = vsel %vm550_vm3, %v376_v21, 112  ;;  %v443_v2 = vcvt.f32.s32 %v2131_v24 }
 0x220   : > { %953 = vst.msk [vmem:[%s2310_s29] sm:$0xff] %vm952_vm7, %v936_v27  ;;  %v704_v34 = vadd.s32 %v2199_v37, %v701_v9  ;;  %v718_v60 = vadd.s32 %v2201_v45, %v715_v36  ;;  %v567_v44 = vsel %vm551_vm5, %v390_v32, 112  ;;  %v418_v9 = vadd.s32 %v2124_v41, %v415_v38 }
 0x221   : > { %v728_v14 = vpop.xlane.xlu1 %727  ;;  %v742_v50 = vpop.xlane.xlu0 %741  ;;  %v429_v36 = vcvt.f32.s32 %v2129_v39  ;;  %vm909_vm3 = vcmp.lt.s32.totalorder %v2186_v28, %v2255_v3  ;;  %v457_v21 = vcvt.f32.s32 %v2163_v10  ;;  %vm558_vm4 = vcmp.lt.s32.totalorder %v2231_v25, %v2101_v0 }
 0x222   : > { %v920_v37 = vsel %vm904_vm8, %v704_v34, 112  ;;  %v921_v12 = vsel %vm905_vm9, %v718_v60, 112  ;;  %v729_v45 = vcvt.f32.s32 %v728_v14  ;;  %v743_v57 = vcvt.f32.s32 %v742_v50 }
 0x223   : > { %v937_v18 = vsel %vm935_vm6, %v564_v1, %v920_v37  ;;  %v938_v15 = vsel %vm935_vm6, %v565_v56, %v921_v12  ;;  %v569_v34 = vsel %vm553_vm12, %v418_v9, 112  ;;  %v432_v60 = vadd.s32 %v2133_v11, %v429_v36 }
 0x224   : > { %954 = vst.msk [vmem:[%s2310_s29 + $0x8] sm:$0xff] %vm952_vm7, %v937_v18  ;;  %955 = vst.msk [vmem:[%s2310_s29 + $0x10] sm:$0xff] %vm952_vm7, %v938_v15  ;;  %v732_v8 = vadd.s32 %v2221_v33, %v729_v45  ;;  %v746_v7 = vadd.s32 %v2228_v59, %v743_v57  ;;  %v446_v1 = vadd.s32 %v2135_v6, %v443_v2  ;;  %v471_v56 = vcvt.f32.s32 %v2165_v31  ;;  %v2617_v45 = vld [vmem:[#allocation14_spill] sm:$0xff]  ;;  %v2618_v57 = vld [vmem:[#allocation19_spill] sm:$0xff] }
 0x225   : > { %v756_v19 = vpop.xlane.xlu1 %755  ;;  %v770_v35 = vpop.xlane.xlu0 %769  ;;  %vm559_vm5 = vcmp.lt.s32.totalorder %v2234_v23, %v2101_v0  ;;  %vm910_vm8 = vcmp.lt.s32.totalorder %v2191_v52, %v2255_v3  ;;  %vm911_vm9 = vcmp.lt.s32.totalorder %v2204_v46, %v2255_v3  ;;  %v460_v14 = vadd.s32 %v2137_v22, %v457_v21 }
 0x226   : > { %v922_v33 = vsel %vm906_vm11, %v732_v8, 112  ;;  %v923_v41 = vsel %vm907_vm13, %v746_v7, 112  ;;  %v757_v39 = vcvt.f32.s32 %v756_v19  ;;  %v771_v59 = vcvt.f32.s32 %v770_v35  ;;  %v2620_v19 = vld [vmem:[#allocation16_spill] sm:$0xff] }
 0x227   : > { %v939_v24 = vsel %vm935_vm6, %v566_v4, %v922_v33  ;;  %v940_v27 = vsel %vm935_vm6, %v567_v44, %v923_v41  ;;  %v570_v37 = vsel %vm554_vm14, %v432_v60, 112  ;;  %v571_v12 = vsel %vm555_vm15, %v446_v1, 112  ;;  %v2619_v44 = vld [vmem:[#allocation15_spill] sm:$0xff]  ;;  %v2621_v33 = vld [vmem:[#allocation20_spill] sm:$0xff]  ;;  %v2622_v41 = vld [vmem:[#allocation21_spill] sm:$0xff] }
 0x228   : > { %956 = vst.msk [vmem:[%s2310_s29 + $0x18] sm:$0xff] %vm952_vm7, %v939_v24  ;;  %957 = vst.msk [vmem:[%s2310_s29 + $0x20] sm:$0xff] %vm952_vm7, %v940_v27  ;;  %v760_v53 = vadd.s32 %v2257_v43, %v757_v39  ;;  %v774_v54 = vadd.s32 %v2259_v62, %v771_v59  ;;  %v474_v22 = vadd.s32 %v2617_v45, %v471_v56  ;;  %v499_v13 = vcvt.f32.s32 %v2618_v57 }
 0x229   : > { %v784_v10 = vpop.xlane.xlu1 %783  ;;  %v798_v32 = vpop.xlane.xlu0 %797  ;;  %vm561_vm11 = vcmp.lt.s32.totalorder %v2265_v63, %v2101_v0  ;;  %vm912_vm12 = vcmp.lt.s32.totalorder %v2207_v5, %v2255_v3  ;;  %vm913_vm13 = vcmp.lt.s32.totalorder %v2226_v47, %v2255_v3  ;;  %v572_v52 = vsel %vm556_vm0, %v460_v14, 112  ;;  %v2623_v47 = vld [vmem:[#allocation13_spill] sm:$0xff] }
 0x22a   : > { %v924_v43 = vsel %vm908_vm2, %v760_v53, 112  ;;  %v925_v11 = vsel %vm909_vm3, %v774_v54, 112  ;;  %v785_v6 = vcvt.f32.s32 %v784_v10  ;;  %v799_v62 = vcvt.f32.s32 %v798_v32  ;;  %v2624_v10 = vld [vmem:[#allocation17_spill] sm:$0xff] }
 0x22b   : > { %v941_v31 = vsel %vm935_vm6, %v568_v30, %v924_v43  ;;  %v942_v38 = vsel %vm935_vm6, %v569_v34, %v925_v11  ;;  %v488_v9 = vadd.s32 %v2619_v44, %v485_v51  ;;  %v573_v2 = vsel %vm557_vm1, %v474_v22, 112  ;;  %v2625_v43 = vld [vmem:[#allocation18_spill] sm:$0xff] }
 0x22c   : > { %958 = vst.msk [vmem:[%s2310_s29 + $0x28] sm:$0xff] %vm952_vm7, %v941_v31  ;;  %959 = vst.msk [vmem:[%s2310_s29 + $0x30] sm:$0xff] %vm952_vm7, %v942_v38  ;;  %v788_v28 = vadd.s32 %v2267_v16, %v785_v6  ;;  %v802_v50 = vadd.s32 %v2269_v48, %v799_v62  ;;  %v502_v35 = vadd.s32 %v2620_v19, %v499_v13  ;;  %v513_v5 = vcvt.f32.s32 %v2621_v33 }
 0x22d   : > { %v812_v18 = vpop.xlane.xlu1 %811  ;;  %v826_v15 = vpop.xlane.xlu0 %825  ;;  %v527_v39 = vcvt.f32.s32 %v2622_v41  ;;  %vm914_vm14 = vcmp.lt.s32.totalorder %v2231_v25, %v2255_v3  ;;  %vm915_vm15 = vcmp.lt.s32.totalorder %v2234_v23, %v2255_v3  ;;  %v898_v54 = vcvt.f32.s32 %v2623_v47  ;;  %v2626_v23 = vld [vmem:[#allocation23_spill] sm:$0xff] }
 0x22e   : > { %v926_v16 = vsel %vm910_vm8, %v788_v28, 112  ;;  %v927_v48 = vsel %vm911_vm9, %v802_v50, 112  ;;  %v813_v4 = vcvt.f32.s32 %v812_v18  ;;  %v827_v55 = vcvt.f32.s32 %v826_v15 }
 0x22f   : > { %v943_v8 = vsel %vm935_vm6, %v570_v37, %v926_v16  ;;  %v944_v7 = vsel %vm935_vm6, %v571_v12, %v927_v48  ;;  %v574_v34 = vsel %vm558_vm4, %v488_v9, 112  ;;  %v575_v56 = vsel %vm559_vm5, %v502_v35, 112 }
 0x230   : > { %960 = vst.msk [vmem:[%s2310_s29 + $0x38] sm:$0xff] %vm952_vm7, %v943_v8  ;;  %961 = vst.msk [vmem:[%s2310_s29 + $0x40] sm:$0xff] %vm952_vm7, %v944_v7  ;;  %v816_v46 = vadd.s32 %v2284_v20, %v813_v4  ;;  %v830_v36 = vadd.s32 %v2286_v17, %v827_v55  ;;  %v516_v32 = vadd.s32 %v2624_v10, %v513_v5  ;;  %v541_v25 = vcvt.f32.s32 %v2280_v29 }
 0x231   : > { %v840_v59 = vpop.xlane.xlu1 %839  ;;  %v854_v24 = vpop.xlane.xlu0 %853  ;;  %v530_v11 = vadd.s32 %v2625_v43, %v527_v39  ;;  %vm916_vm0 = vcmp.lt.s32.totalorder %v2262_v61, %v2255_v3  ;;  %vm917_vm1 = vcmp.lt.s32.totalorder %v2265_v63, %v2255_v3  ;;  %v2627_v28 = vcvt.f32.s32 %v2626_v23 }
 0x232   : > { %v928_v27 = vsel %vm912_vm12, %v816_v46, 112  ;;  %v929_v30 = vsel %vm913_vm13, %v830_v36, 112  ;;  %v841_v21 = vcvt.f32.s32 %v840_v59  ;;  %v855_v20 = vcvt.f32.s32 %v854_v24 }
 0x233   : > { %v945_v17 = vsel %vm935_vm6, %v572_v52, %v928_v27  ;;  %v946_v53 = vsel %vm935_vm6, %v573_v2, %v929_v30  ;;  %v543_v50 = vshll.u32 %v2627_v28, 16  ;;  %v899_v12 = vshll.u32 %v898_v54, 16 }
 0x234   : > { %962 = vst.msk [vmem:[%s2310_s29 + $0x48] sm:$0xff] %vm952_vm7, %v945_v17  ;;  %963 = vst.msk [vmem:[%s2310_s29 + $0x50] sm:$0xff] %vm952_vm7, %v946_v53  ;;  %v844_v60 = vadd.s32 %v2296_v49, %v841_v21  ;;  %v858_v1 = vadd.s32 %v2298_v40, %v855_v20  ;;  %v576_v45 = vsel %vm560_vm10, %v516_v32, 112  ;;  %v577_v22 = vsel %vm561_vm11, %v530_v11, 112 }
 0x235   : > { %v868_v6 = vpop.xlane.xlu1 %867  ;;  %v882_v62 = vpop.xlane.xlu0 %881  ;;  %v544_v13 = vadd.s32 %v543_v50, %v541_v25  ;;  %vm562_vm2 = vcmp.lt.s32.totalorder %v2278_v42, %v2101_v0  ;;  %vm918_vm3 = vcmp.lt.s32.totalorder %v2278_v42, %v2255_v3 }
 0x236   : > { %v930_v31 = vsel %vm914_vm14, %v844_v60, 112  ;;  %v931_v38 = vsel %vm915_vm15, %v858_v1, 112  ;;  %v869_v14 = vcvt.f32.s32 %v868_v6  ;;  %v883_v49 = vcvt.f32.s32 %v882_v62 }
 0x237   : > { %v947_v40 = vsel %vm935_vm6, %v574_v34, %v930_v31  ;;  %v948_v51 = vsel %vm935_vm6, %v575_v56, %v931_v38  ;;  %v578_v63 = vsel %vm562_vm2, %v544_v13, 112 }
 0x238   : > { %964 = vst.msk [vmem:[%s2310_s29 + $0x58] sm:$0xff] %vm952_vm7, %v947_v40  ;;  %965 = vst.msk [vmem:[%s2310_s29 + $0x60] sm:$0xff] %vm952_vm7, %v948_v51  ;;  %v872_v29 = vadd.s32 %v2351_v26, %v869_v14  ;;  %v886_v37 = vadd.s32 %v2353_v58, %v883_v49 }
 0x239   : > { %v896_v57 = vpop.xlane.xlu1 %895 }
 0x23a   : > { %v932_v18 = vsel %vm916_vm0, %v872_v29, 112  ;;  %v933_v15 = vsel %vm917_vm1, %v886_v37, 112  ;;  %v897_v16 = vcvt.f32.s32 %v896_v57 }
 0x23b   : > { %v949_v26 = vsel %vm935_vm6, %v576_v45, %v932_v18  ;;  %v950_v58 = vsel %vm935_vm6, %v577_v22, %v933_v15 }
 0x23c   : > { %966 = vst.msk [vmem:[%s2310_s29 + $0x68] sm:$0xff] %vm952_vm7, %v949_v26  ;;  %967 = vst.msk [vmem:[%s2310_s29 + $0x70] sm:$0xff] %vm952_vm7, %v950_v58  ;;  %v900_v61 = vadd.s32 %v899_v12, %v897_v16 }
 0x23e   : > { %v934_v48 = vsel %vm918_vm3, %v900_v61, 112 }
 0x23f   : > { %v951_v4 = vsel %vm935_vm6, %v578_v63, %v934_v48 }
 0x240   : > { %968 = vst.msk [vmem:[%s2310_s29 + $0x78] sm:$0xff] %vm952_vm7, %v951_v4 }
 0x241   : > { %s1157_s8 = sshll.u32 %s1366_s0, 11  ;;  %s1004_s9 = sshll.u32 %s1469_s13, 4  ;;  %s1005_s9 = int_to_ptr.vmem [resolvable:$true] %s1004_s9 }
 0x242   : > { %s987_s14 = scalar_lea.hbm %s2564_s2, %s1157_s8  ;;  %s1306_s18 = smov 2048  }
 0x243   : > { %p2628_p0 = scmp.ne.s32.totalorder %s2582_s6, 0  ;;  %s1307_s12 = smov 4096  }
 0x244   : > { %s1308_s19 = smov 16   ;;  %s1309_s5 = smov 128  }
 0x245   : > { %1160 = sst [smem:[#allocation9]] (%p2628_p0), %s1306_s18  ;;  %s1310_s0 = smov 8  }
 0x246   : > { %1161 = sst [smem:[#allocation9 + $0x1]] (%p2628_p0), %s1307_s12  ;;  %s1311_s13 = smov [#allocation8]  }
 0x247   : > { %1162 = sst [smem:[#allocation9 + $0x2]] (%p2628_p0), %s1308_s19  ;;  %s1312_s15 = smov 0  }
 0x248   : > { %1163 = sst [smem:[#allocation9 + $0x3]] (%p2628_p0), %s1309_s5 }
 0x249   : > { %1164 = sst [smem:[#allocation9 + $0x4]] (%p2628_p0), %s1309_s5 }
 0x24a   : > { %1165 = sst [smem:[#allocation9 + $0x5]] (%p2628_p0), %s1310_s0 }
 0x24b   : > { %1166 = dma.general (%p2628_p0), %s1005_s9, 4096, %s987_s14, %s970_s4, %s1311_s13, [#allocation9], %s1312_s15, 0  }
 0x24c PF: > { %s1036_s16 = sand.u32 1, %s1288_s22   ;;  %p2629_p1 = scmp.ne.s32.totalorder %s2583_s7, 0 }
 0x24d   : > { %p2630_p2 = scmp.ge.s32.totalorder %s1300_s25, 2  ;;  %s1037_s17 = scalar_lea.sflag [#allocation6], %s1036_s16 }
 0x24f   : > { %p1173_p11 = pnand %p2630_p2, %p2629_p1 }
 0x251   : > { %1283 = dma.done.wait (!%p1173_p11), %s1037_s17, 4096  }
 0x252   : > { %1285 = vsyncadd (!%p1173_p11), %s1037_s17, 4294963200  ;;  %p21_p13 = scmp.ge.s32.totalorder %s1370_s27, 4   ;;  %s2631_s22 = smov %s1292_s23 }
 0x253   : > { %s2632_s23 = smov %s1296_s24  ;;  %s2633_s24 = smov %s1382_s30 }
 0x254   : > { %s2634_s25 = smov %s1370_s27  ;;  %23 = sbr.rel (!%p21_p13) target bundleno = 17 (0x11), region = 88 }
 0x25b   :  { %1050 = vsyncpa [#allocation5], 1 }
 0x25c   :  { %1052 = vsyncpa [#allocation5 + $0x1], 1 }
 0x25d   :  { %1053 = vsyncpa [#allocation6], 1 }
 0x25e   :  { %1055 = vsyncpa [#allocation6 + $0x1], 1 }

</bundles_post_ra>
